<compile_context>
chip_gen: v7x
topology: tpu7x:2x2x1
jax: 0.10.0
libtpu: 0.0.40
codegen_flags: <defaults>
</compile_context>

<pallas_src>
import jax
import jax.numpy as jnp
from jax.experimental import pallas as pl
from jax.experimental.pallas import tpu as pltpu


# ----------------------------- kernel ----------------------------------------
def gru_kernel(xproj_ref, h0_ref, wzr_ref, whh_ref, out_ref, h_scratch):
    """One grid step = TT GRU time steps for one batch block.

    xproj_ref: (TT, BB, 3L) bf16  precomputed x @ [W_z_x|W_r_x|W_h_x] + biases
    h0_ref:    (BB, L)      f32
    wzr_ref:   (L, 2L)      bf16  fused recurrent weights for z | r
    whh_ref:   (L, L)       bf16  recurrent weight for the candidate state
    out_ref:   (TT, BB, L)  f32
    h_scratch: (BB, L)      f32   hidden state carried across time blocks
    """
    t_blk = pl.program_id(1)

    # Time is the innermost ("arbitrary") grid axis: reset the carried hidden
    # state at the first time block of each batch block.
    @pl.when(t_blk == 0)
    def _():
        h_scratch[...] = h0_ref[...]

    # Loop-invariant weight loads hoisted out of the time loop.
    w_zr = wzr_ref[...]                       # (L, 2L) bf16
    w_hh = whh_ref[...]                       # (L, L)  bf16
    L = w_hh.shape[0]
    TT = xproj_ref.shape[0]

    def step(i, h):
        # h stays f32; only the MXU operands go through bf16.
        x_t = xproj_ref[i].astype(jnp.float32)          # (BB, 3L)
        zr = jnp.dot(h.astype(jnp.bfloat16), w_zr,
                     preferred_element_type=jnp.float32) + x_t[:, :2 * L]
        z = jax.nn.sigmoid(zr[:, :L])
        r = jax.nn.sigmoid(zr[:, L:])
        h_tilde = jnp.tanh(
            jnp.dot((r * h).astype(jnp.bfloat16), w_hh,
                    preferred_element_type=jnp.float32) + x_t[:, 2 * L:])
        new_h = h + z * (h_tilde - h)          # == (1-z)*h + z*h_tilde, 1 op less
        out_ref[i] = new_h
        return new_h

    # Each step depends on the previous h (serial chain) — partial unroll keeps
    # LLO scheduling visibility without blowing vreg live ranges at large TT.
    h_final = jax.lax.fori_loop(0, TT, step, h_scratch[...],
                                unroll=min(TT, 8))
    h_scratch[...] = h_final


# ----------------------------- wrapper ----------------------------------------
def _largest_divisor_le(n, k):
    for d in range(max(1, min(n, k)), 0, -1):
        if n % d == 0:
            return d
    return 1


def gru_forward(x, h0, kernel_params, *, time_block=32, batch_block=None,
                vmem_budget_bytes=48 * 1024 * 1024):
    """x: (T, B, input_size) f32, h0: (B, latent_size) f32.

    kernel_params = (w_zr_h (L,2L) bf16, w_hh (L,L) bf16,
                     w_x_all (D_in,3L) f32, b_all (3L,) f32)
    Returns hidden_outputs: (T, B, latent_size) f32 — same semantics as the
    PyTorch module's forward() (which only returns the per-step hidden states).
    """
    w_zr_h, w_hh, w_x_all, b_all = kernel_params
    T, B, _ = x.shape
    L = h0.shape[-1]

    BB = B if batch_block is None else batch_block
    assert B % BB == 0, "batch_block must divide B"
    # v5e/v6e: keep BB == B (single TensorCore — batch splitting only
    # serializes the grid).  v7x: BB = B // 2 to shard across the two TCs.

    # ---- Hoisted x-projection: one big matmul, off the serial path ----------
    # Stored bf16 in HBM: halves the dominant streaming DMA per grid step.
    xproj = (jnp.einsum("tbd,dg->tbg", x, w_x_all) + b_all
             ).astype(jnp.bfloat16)                               # (T, B, 3L)

    # ---- Derive TT from the VMEM budget, no padding (TT divides T) ----------
    # Double-buffered streaming blocks per time step: xproj (bf16) + out (f32).
    per_step_bytes = BB * (3 * L * 2 * 2 + L * 4 * 2)
    # Weights (bf16, worst-case double-buffered), h0 (f32), h scratch (f32).
    fixed_bytes = 2 * (L * 2 * L + L * L) * 2 + 2 * BB * L * 4 + BB * L * 4
    max_tt = max(1, (vmem_budget_bytes - fixed_bytes) // per_step_bytes)
    TT = _largest_divisor_le(T, min(time_block, max_tt, T))

    needed_bytes = fixed_bytes + per_step_bytes * TT
    vmem_limit = int(min(max(2 * needed_bytes + (4 << 20), 32 << 20), 64 << 20))

    grid = (B // BB, T // TT)   # (batch blocks [parallel], time [serial])

    def _call(single_buffer_weights):
        kw = dict(pipeline_mode=pl.Buffered(1)) if single_buffer_weights else {}
        in_specs = [
            pl.BlockSpec((TT, BB, 3 * L), lambda b, t: (t, b, 0)),        # xproj
            pl.BlockSpec((BB, L), lambda b, t: (b, 0), **kw),             # h0
            pl.BlockSpec((L, 2 * L), lambda b, t: (0, 0), **kw),          # W_zr_h
            pl.BlockSpec((L, L), lambda b, t: (0, 0), **kw),              # W_hh
        ]
        return pl.pallas_call(
            gru_kernel,
            out_shape=jax.ShapeDtypeStruct((T, B, L), jnp.float32),
            grid_spec=pltpu.PrefetchScalarGridSpec(
                num_scalar_prefetch=0,
                grid=grid,
                in_specs=in_specs,
                out_specs=pl.BlockSpec((TT, BB, L), lambda b, t: (t, b, 0)),
                scratch_shapes=[pltpu.VMEM((BB, L), jnp.float32)],
            ),
            compiler_params=pltpu.CompilerParams(
                # Batch blocks are independent -> parallel; time carries h in
                # scratch -> strictly arbitrary/sequential (never parallel).
                dimension_semantics=("parallel", "arbitrary"),
                vmem_limit_bytes=vmem_limit),
        )(xproj, h0, w_zr_h, w_hh)

    try:
        # Constant-index blocks never re-fetch; single-buffer them to reclaim
        # VMEM for a deeper TT.
        return _call(True)
    except Exception:
        # Compatibility fallback for JAX versions where BlockSpec has no
        # pipeline_mode / pl.Buffered(1) is rejected — correctness-identical.
        return _call(False)


# ----------------------------- parameter glue --------------------------------
def make_linear_params(key, in_features, out_features):
    """PyTorch nn.Linear-style uniform init (weight is (out, in))."""
    k_w, k_b = jax.random.split(key)
    bound = 1.0 / jnp.sqrt(in_features)
    w = jax.random.uniform(k_w, (out_features, in_features), jnp.float32,
                           -bound, bound)
    b = jax.random.uniform(k_b, (out_features,), jnp.float32, -bound, bound)
    return w, b


def prepare_kernel_params(raw_params, latent_size):
    """Split each nn.Linear weight (out, L+D_in) along the cat([h, x]) input,
    pre-transpose to (in, out) and fuse:
      - z/r recurrent parts  -> W_zr_h (L, 2L)   stored bf16 (MXU native)
      - candidate recurrent  -> W_hh   (L, L)    stored bf16
      - all three x parts    -> W_x_all (D_in, 3L) f32 (hoisted matmul)
      - all three biases     -> b_all (3L,)      f32
    """
    (wz, bz), (wr, br), (wh, bh) = raw_params
    L = latent_size
    wz_h, wz_x = wz[:, :L].T, wz[:, L:].T
    wr_h, wr_x = wr[:, :L].T, wr[:, L:].T
    wh_h, wh_x = wh[:, :L].T, wh[:, L:].T
    w_zr_h = jnp.concatenate([wz_h, wr_h], axis=1).astype(jnp.bfloat16)  # (L,2L)
    w_hh = wh_h.astype(jnp.bfloat16)                                     # (L,L)
    w_x_all = jnp.concatenate([wz_x, wr_x, wh_x], axis=1)                # (D,3L)
    b_all = jnp.concatenate([bz, br, bh])                                # (3L,)
    return w_zr_h, w_hh, w_x_all, b_all


def gru_reference(x, h0, raw_params):
    """Pure-JAX f32 reference written exactly like the PyTorch one_step()."""
    (wz, bz), (wr, br), (wh, bh) = raw_params

    def step(h, x_t):
        hx = jnp.concatenate([h, x_t], axis=-1)
        z = jax.nn.sigmoid(hx @ wz.T + bz)
        r = jax.nn.sigmoid(hx @ wr.T + br)
        rhx = jnp.concatenate([r * h, x_t], axis=-1)
        new_h = (1.0 - z) * h + z * jnp.tanh(rhx @ wh.T + bh)
        return new_h, new_h

    _, hs = jax.lax.scan(step, h0, x)
    return hs


if __name__ == "__main__":
    # Small, lane/MXU-aligned demo shapes: L = 128 (lane width), B multiple of
    # 8 (sublane).  T=8 with time_block=4 exercises the cross-block h carry.
    T, B, input_size, latent_size = 8, 8, 16, 128
    # TODO(synk): nn.Embedding lookup and the linearDecode head are outside the
    # recurrent forward() hot path (a table lookup / a single matmul); forward()
    # only returns hidden_outputs, so they are not part of this kernel.

    key = jax.random.PRNGKey(0)
    k_x, k_z, k_r, k_h = jax.random.split(key, 4)

    x = jax.random.normal(k_x, (T, B, input_size), jnp.float32)
    h0 = jnp.zeros((B, latent_size), jnp.float32)   # forward(h=None) semantics

    raw_params = (
        make_linear_params(k_z, latent_size + input_size, latent_size),
        make_linear_params(k_r, latent_size + input_size, latent_size),
        make_linear_params(k_h, latent_size + input_size, latent_size),
    )
    kernel_params = prepare_kernel_params(raw_params, latent_size)

    out = gru_forward(x, h0, kernel_params, time_block=4)
    out = jax.block_until_ready(out)

    ref = jax.block_until_ready(gru_reference(x, h0, raw_params))
    assert out.shape == (T, B, latent_size)
    # Relaxed tolerance: weights / x-projections go through bf16 on the MXU,
    # while gates, blend and the h carry stay f32.
    assert jnp.allclose(out, ref, rtol=5e-2, atol=5e-2), "mismatch vs reference"

    print("KERNEL_OK")
</pallas_src>

<mosaic_0001>
module attributes {stable_mosaic.version = 11 : i64} {
  func.func @gru_kernel(%arg0: i32, %arg1: i32, %arg2: memref<4x8x384xbf16, #tpu.memory_space<vmem>>, %arg3: memref<8x128xf32, #tpu.memory_space<vmem>>, %arg4: memref<128x256xbf16, #tpu.memory_space<vmem>>, %arg5: memref<128x128xbf16, #tpu.memory_space<vmem>>, %arg6: memref<4x8x128xf32, #tpu.memory_space<vmem>>, %arg7: memref<8x128xf32, #tpu.memory_space<vmem>>) attributes {dimension_semantics = [#tpu.dimension_semantics<parallel>, #tpu.dimension_semantics<arbitrary>], iteration_bounds = array<i64: 1, 2>, scalar_prefetch = 0 : i64, scratch_operands = 1 : i64, tpu.core_type = #tpu.core_type<tc>, window_params = [{transform_indices = @transform_0, window_bounds = array<i64: 4, 8, 384>}, {pipeline_mode = #tpu.pipeline_mode<synchronous>, transform_indices = @transform_1, window_bounds = array<i64: 8, 128>}, {pipeline_mode = #tpu.pipeline_mode<synchronous>, transform_indices = @transform_2, window_bounds = array<i64: 128, 256>}, {pipeline_mode = #tpu.pipeline_mode<synchronous>, transform_indices = @transform_3, window_bounds = array<i64: 128, 128>}, {transform_indices = @transform_4, window_bounds = array<i64: 4, 8, 128>}]} {
    %c0_i32 = arith.constant 0 : i32
    %0 = arith.cmpi eq, %arg1, %c0_i32 : i32
    %1 = arith.extui %0 : i1 to i32
    %c0_i32_0 = arith.constant 0 : i32
    %2 = arith.cmpi ne, %1, %c0_i32_0 : i32
    scf.if %2 {
      %c0_40 = arith.constant 0 : index
      %c0_41 = arith.constant 0 : index
      %139 = vector.load %arg3[%c0_40, %c0_41] : memref<8x128xf32, #tpu.memory_space<vmem>>, vector<8x128xf32>
      %c0_42 = arith.constant 0 : index
      %c0_43 = arith.constant 0 : index
      %140 = vector.load %arg7[%c0_42, %c0_43] : memref<8x128xf32, #tpu.memory_space<vmem>>, vector<8x128xf32>
      tpu.vector_store %arg7[%c0_42, %c0_43], %139 {strides = array<i32>} : memref<8x128xf32, #tpu.memory_space<vmem>>, vector<8x128xf32>,
    } else {
    }
    %c0 = arith.constant 0 : index
    %c0_1 = arith.constant 0 : index
    %3 = vector.load %arg4[%c0, %c0_1] : memref<128x256xbf16, #tpu.memory_space<vmem>>, vector<128x256xbf16>
    %c0_2 = arith.constant 0 : index
    %c0_3 = arith.constant 0 : index
    %4 = vector.load %arg5[%c0_2, %c0_3] : memref<128x128xbf16, #tpu.memory_space<vmem>>, vector<128x128xbf16>
    %c0_4 = arith.constant 0 : index
    %c0_5 = arith.constant 0 : index
    %5 = vector.load %arg7[%c0_4, %c0_5] : memref<8x128xf32, #tpu.memory_space<vmem>>, vector<8x128xf32>
    %c0_i32_6 = arith.constant 0 : i32
    %6 = arith.index_cast %c0_i32_6 : i32 to index
    %c0_7 = arith.constant 0 : index
    %c0_8 = arith.constant 0 : index
    %7 = vector.load %arg2[%6, %c0_7, %c0_8] : memref<4x8x384xbf16, #tpu.memory_space<vmem>>, vector<1x8x384xbf16>
    %8 = vector.shape_cast %7 : vector<1x8x384xbf16> to vector<8x384xbf16>
    %9 = arith.extf %8 : vector<8x384xbf16> to vector<8x384xf32>
    %10 = arith.truncf %5 : vector<8x128xf32> to vector<8x128xbf16>
    %cst = arith.constant dense<0.000000e+00> : vector<8x256xf32>
    %11 = tpu.matmul %10, %3, %cst {dimension_numbers = #tpu.dot_dimension_numbers<[1], [0], [0], [1], [0, 0, 1, 1], [], []>} : vector<8x128xbf16>, vector<128x256xbf16>, vector<8x256xf32> -> vector<8x256xf32>
    %12 = vector.extract_strided_slice %9 {offsets = [0, 0], sizes = [8, 256], strides = [1, 1]} : vector<8x384xf32> to vector<8x256xf32>
    %13 = arith.addf %11, %12 : vector<8x256xf32>
    %14 = vector.extract_strided_slice %13 {offsets = [0, 0], sizes = [8, 128], strides = [1, 1]} : vector<8x256xf32> to vector<8x128xf32>
    %15 = arith.negf %14 : vector<8x128xf32>
    %16 = math.exp %15 : vector<8x128xf32>
    %cst_9 = arith.constant 1.000000e+00 : f32
    %17 = vector.broadcast %cst_9 : f32 to vector<8x128xf32>
    %18 = arith.addf %17, %16 : vector<8x128xf32>
    %19 = arith.divf %17, %18 : vector<8x128xf32>
    %20 = vector.extract_strided_slice %13 {offsets = [0, 128], sizes = [8, 128], strides = [1, 1]} : vector<8x256xf32> to vector<8x128xf32>
    %21 = arith.negf %20 : vector<8x128xf32>
    %22 = math.exp %21 : vector<8x128xf32>
    %cst_10 = arith.constant 1.000000e+00 : f32
    %23 = vector.broadcast %cst_10 : f32 to vector<8x128xf32>
    %24 = arith.addf %23, %22 : vector<8x128xf32>
    %25 = arith.divf %23, %24 : vector<8x128xf32>
    %26 = arith.mulf %25, %5 : vector<8x128xf32>
    %27 = arith.truncf %26 : vector<8x128xf32> to vector<8x128xbf16>
    %cst_11 = arith.constant dense<0.000000e+00> : vector<8x128xf32>
    %28 = tpu.matmul %27, %4, %cst_11 {dimension_numbers = #tpu.dot_dimension_numbers<[1], [0], [0], [1], [0, 0, 1, 1], [], []>} : vector<8x128xbf16>, vector<128x128xbf16>, vector<8x128xf32> -> vector<8x128xf32>
    %29 = vector.extract_strided_slice %9 {offsets = [0, 256], sizes = [8, 128], strides = [1, 1]} : vector<8x384xf32> to vector<8x128xf32>
    %30 = arith.addf %28, %29 : vector<8x128xf32>
    %31 = math.tanh %30 : vector<8x128xf32>
    %32 = arith.subf %31, %5 : vector<8x128xf32>
    %33 = arith.mulf %19, %32 : vector<8x128xf32>
    %34 = arith.addf %5, %33 : vector<8x128xf32>
    %35 = arith.index_cast %c0_i32_6 : i32 to index
    %c0_12 = arith.constant 0 : index
    %c0_13 = arith.constant 0 : index
    %36 = vector.load %arg6[%35, %c0_12, %c0_13] : memref<4x8x128xf32, #tpu.memory_space<vmem>>, vector<1x8x128xf32>
    %37 = vector.shape_cast %36 : vector<1x8x128xf32> to vector<8x128xf32>
    %38 = vector.shape_cast %34 : vector<8x128xf32> to vector<1x8x128xf32>
    tpu.vector_store %arg6[%35, %c0_12, %c0_13], %38 {strides = array<i32>} : memref<4x8x128xf32, #tpu.memory_space<vmem>>, vector<1x8x128xf32>,
    %c1_i32 = arith.constant 1 : i32
    %39 = arith.index_cast %c1_i32 : i32 to index
    %c0_14 = arith.constant 0 : index
    %c0_15 = arith.constant 0 : index
    %40 = vector.load %arg2[%39, %c0_14, %c0_15] : memref<4x8x384xbf16, #tpu.memory_space<vmem>>, vector<1x8x384xbf16>
    %41 = vector.shape_cast %40 : vector<1x8x384xbf16> to vector<8x384xbf16>
    %42 = arith.extf %41 : vector<8x384xbf16> to vector<8x384xf32>
    %43 = arith.truncf %34 : vector<8x128xf32> to vector<8x128xbf16>
    %cst_16 = arith.constant dense<0.000000e+00> : vector<8x256xf32>
    %44 = tpu.matmul %43, %3, %cst_16 {dimension_numbers = #tpu.dot_dimension_numbers<[1], [0], [0], [1], [0, 0, 1, 1], [], []>} : vector<8x128xbf16>, vector<128x256xbf16>, vector<8x256xf32> -> vector<8x256xf32>
    %45 = vector.extract_strided_slice %42 {offsets = [0, 0], sizes = [8, 256], strides = [1, 1]} : vector<8x384xf32> to vector<8x256xf32>
    %46 = arith.addf %44, %45 : vector<8x256xf32>
    %47 = vector.extract_strided_slice %46 {offsets = [0, 0], sizes = [8, 128], strides = [1, 1]} : vector<8x256xf32> to vector<8x128xf32>
    %48 = arith.negf %47 : vector<8x128xf32>
    %49 = math.exp %48 : vector<8x128xf32>
    %cst_17 = arith.constant 1.000000e+00 : f32
    %50 = vector.broadcast %cst_17 : f32 to vector<8x128xf32>
    %51 = arith.addf %50, %49 : vector<8x128xf32>
    %52 = arith.divf %50, %51 : vector<8x128xf32>
    %53 = vector.extract_strided_slice %46 {offsets = [0, 128], sizes = [8, 128], strides = [1, 1]} : vector<8x256xf32> to vector<8x128xf32>
    %54 = arith.negf %53 : vector<8x128xf32>
    %55 = math.exp %54 : vector<8x128xf32>
    %cst_18 = arith.constant 1.000000e+00 : f32
    %56 = vector.broadcast %cst_18 : f32 to vector<8x128xf32>
    %57 = arith.addf %56, %55 : vector<8x128xf32>
    %58 = arith.divf %56, %57 : vector<8x128xf32>
    %59 = arith.mulf %58, %34 : vector<8x128xf32>
    %60 = arith.truncf %59 : vector<8x128xf32> to vector<8x128xbf16>
    %cst_19 = arith.constant dense<0.000000e+00> : vector<8x128xf32>
    %61 = tpu.matmul %60, %4, %cst_19 {dimension_numbers = #tpu.dot_dimension_numbers<[1], [0], [0], [1], [0, 0, 1, 1], [], []>} : vector<8x128xbf16>, vector<128x128xbf16>, vector<8x128xf32> -> vector<8x128xf32>
    %62 = vector.extract_strided_slice %42 {offsets = [0, 256], sizes = [8, 128], strides = [1, 1]} : vector<8x384xf32> to vector<8x128xf32>
    %63 = arith.addf %61, %62 : vector<8x128xf32>
    %64 = math.tanh %63 : vector<8x128xf32>
    %65 = arith.subf %64, %34 : vector<8x128xf32>
    %66 = arith.mulf %52, %65 : vector<8x128xf32>
    %67 = arith.addf %34, %66 : vector<8x128xf32>
    %68 = arith.index_cast %c1_i32 : i32 to index
    %c0_20 = arith.constant 0 : index
    %c0_21 = arith.constant 0 : index
    %69 = vector.load %arg6[%68, %c0_20, %c0_21] : memref<4x8x128xf32, #tpu.memory_space<vmem>>, vector<1x8x128xf32>
    %70 = vector.shape_cast %69 : vector<1x8x128xf32> to vector<8x128xf32>
    %71 = vector.shape_cast %67 : vector<8x128xf32> to vector<1x8x128xf32>
    tpu.vector_store %arg6[%68, %c0_20, %c0_21], %71 {strides = array<i32>} : memref<4x8x128xf32, #tpu.memory_space<vmem>>, vector<1x8x128xf32>,
    %c2_i32 = arith.constant 2 : i32
    %72 = arith.index_cast %c2_i32 : i32 to index
    %c0_22 = arith.constant 0 : index
    %c0_23 = arith.constant 0 : index
    %73 = vector.load %arg2[%72, %c0_22, %c0_23] : memref<4x8x384xbf16, #tpu.memory_space<vmem>>, vector<1x8x384xbf16>
    %74 = vector.shape_cast %73 : vector<1x8x384xbf16> to vector<8x384xbf16>
    %75 = arith.extf %74 : vector<8x384xbf16> to vector<8x384xf32>
    %76 = arith.truncf %67 : vector<8x128xf32> to vector<8x128xbf16>
    %cst_24 = arith.constant dense<0.000000e+00> : vector<8x256xf32>
    %77 = tpu.matmul %76, %3, %cst_24 {dimension_numbers = #tpu.dot_dimension_numbers<[1], [0], [0], [1], [0, 0, 1, 1], [], []>} : vector<8x128xbf16>, vector<128x256xbf16>, vector<8x256xf32> -> vector<8x256xf32>
    %78 = vector.extract_strided_slice %75 {offsets = [0, 0], sizes = [8, 256], strides = [1, 1]} : vector<8x384xf32> to vector<8x256xf32>
    %79 = arith.addf %77, %78 : vector<8x256xf32>
    %80 = vector.extract_strided_slice %79 {offsets = [0, 0], sizes = [8, 128], strides = [1, 1]} : vector<8x256xf32> to vector<8x128xf32>
    %81 = arith.negf %80 : vector<8x128xf32>
    %82 = math.exp %81 : vector<8x128xf32>
    %cst_25 = arith.constant 1.000000e+00 : f32
    %83 = vector.broadcast %cst_25 : f32 to vector<8x128xf32>
    %84 = arith.addf %83, %82 : vector<8x128xf32>
    %85 = arith.divf %83, %84 : vector<8x128xf32>
    %86 = vector.extract_strided_slice %79 {offsets = [0, 128], sizes = [8, 128], strides = [1, 1]} : vector<8x256xf32> to vector<8x128xf32>
    %87 = arith.negf %86 : vector<8x128xf32>
    %88 = math.exp %87 : vector<8x128xf32>
    %cst_26 = arith.constant 1.000000e+00 : f32
    %89 = vector.broadcast %cst_26 : f32 to vector<8x128xf32>
    %90 = arith.addf %89, %88 : vector<8x128xf32>
    %91 = arith.divf %89, %90 : vector<8x128xf32>
    %92 = arith.mulf %91, %67 : vector<8x128xf32>
    %93 = arith.truncf %92 : vector<8x128xf32> to vector<8x128xbf16>
    %cst_27 = arith.constant dense<0.000000e+00> : vector<8x128xf32>
    %94 = tpu.matmul %93, %4, %cst_27 {dimension_numbers = #tpu.dot_dimension_numbers<[1], [0], [0], [1], [0, 0, 1, 1], [], []>} : vector<8x128xbf16>, vector<128x128xbf16>, vector<8x128xf32> -> vector<8x128xf32>
    %95 = vector.extract_strided_slice %75 {offsets = [0, 256], sizes = [8, 128], strides = [1, 1]} : vector<8x384xf32> to vector<8x128xf32>
    %96 = arith.addf %94, %95 : vector<8x128xf32>
    %97 = math.tanh %96 : vector<8x128xf32>
    %98 = arith.subf %97, %67 : vector<8x128xf32>
    %99 = arith.mulf %85, %98 : vector<8x128xf32>
    %100 = arith.addf %67, %99 : vector<8x128xf32>
    %101 = arith.index_cast %c2_i32 : i32 to index
    %c0_28 = arith.constant 0 : index
    %c0_29 = arith.constant 0 : index
    %102 = vector.load %arg6[%101, %c0_28, %c0_29] : memref<4x8x128xf32, #tpu.memory_space<vmem>>, vector<1x8x128xf32>
    %103 = vector.shape_cast %102 : vector<1x8x128xf32> to vector<8x128xf32>
    %104 = vector.shape_cast %100 : vector<8x128xf32> to vector<1x8x128xf32>
    tpu.vector_store %arg6[%101, %c0_28, %c0_29], %104 {strides = array<i32>} : memref<4x8x128xf32, #tpu.memory_space<vmem>>, vector<1x8x128xf32>,
    %c3_i32 = arith.constant 3 : i32
    %105 = arith.index_cast %c3_i32 : i32 to index
    %c0_30 = arith.constant 0 : index
    %c0_31 = arith.constant 0 : index
    %106 = vector.load %arg2[%105, %c0_30, %c0_31] : memref<4x8x384xbf16, #tpu.memory_space<vmem>>, vector<1x8x384xbf16>
    %107 = vector.shape_cast %106 : vector<1x8x384xbf16> to vector<8x384xbf16>
    %108 = arith.extf %107 : vector<8x384xbf16> to vector<8x384xf32>
    %109 = arith.truncf %100 : vector<8x128xf32> to vector<8x128xbf16>
    %cst_32 = arith.constant dense<0.000000e+00> : vector<8x256xf32>
    %110 = tpu.matmul %109, %3, %cst_32 {dimension_numbers = #tpu.dot_dimension_numbers<[1], [0], [0], [1], [0, 0, 1, 1], [], []>} : vector<8x128xbf16>, vector<128x256xbf16>, vector<8x256xf32> -> vector<8x256xf32>
    %111 = vector.extract_strided_slice %108 {offsets = [0, 0], sizes = [8, 256], strides = [1, 1]} : vector<8x384xf32> to vector<8x256xf32>
    %112 = arith.addf %110, %111 : vector<8x256xf32>
    %113 = vector.extract_strided_slice %112 {offsets = [0, 0], sizes = [8, 128], strides = [1, 1]} : vector<8x256xf32> to vector<8x128xf32>
    %114 = arith.negf %113 : vector<8x128xf32>
    %115 = math.exp %114 : vector<8x128xf32>
    %cst_33 = arith.constant 1.000000e+00 : f32
    %116 = vector.broadcast %cst_33 : f32 to vector<8x128xf32>
    %117 = arith.addf %116, %115 : vector<8x128xf32>
    %118 = arith.divf %116, %117 : vector<8x128xf32>
    %119 = vector.extract_strided_slice %112 {offsets = [0, 128], sizes = [8, 128], strides = [1, 1]} : vector<8x256xf32> to vector<8x128xf32>
    %120 = arith.negf %119 : vector<8x128xf32>
    %121 = math.exp %120 : vector<8x128xf32>
    %cst_34 = arith.constant 1.000000e+00 : f32
    %122 = vector.broadcast %cst_34 : f32 to vector<8x128xf32>
    %123 = arith.addf %122, %121 : vector<8x128xf32>
    %124 = arith.divf %122, %123 : vector<8x128xf32>
    %125 = arith.mulf %124, %100 : vector<8x128xf32>
    %126 = arith.truncf %125 : vector<8x128xf32> to vector<8x128xbf16>
    %cst_35 = arith.constant dense<0.000000e+00> : vector<8x128xf32>
    %127 = tpu.matmul %126, %4, %cst_35 {dimension_numbers = #tpu.dot_dimension_numbers<[1], [0], [0], [1], [0, 0, 1, 1], [], []>} : vector<8x128xbf16>, vector<128x128xbf16>, vector<8x128xf32> -> vector<8x128xf32>
    %128 = vector.extract_strided_slice %108 {offsets = [0, 256], sizes = [8, 128], strides = [1, 1]} : vector<8x384xf32> to vector<8x128xf32>
    %129 = arith.addf %127, %128 : vector<8x128xf32>
    %130 = math.tanh %129 : vector<8x128xf32>
    %131 = arith.subf %130, %100 : vector<8x128xf32>
    %132 = arith.mulf %118, %131 : vector<8x128xf32>
    %133 = arith.addf %100, %132 : vector<8x128xf32>
    %134 = arith.index_cast %c3_i32 : i32 to index
    %c0_36 = arith.constant 0 : index
    %c0_37 = arith.constant 0 : index
    %135 = vector.load %arg6[%134, %c0_36, %c0_37] : memref<4x8x128xf32, #tpu.memory_space<vmem>>, vector<1x8x128xf32>
    %136 = vector.shape_cast %135 : vector<1x8x128xf32> to vector<8x128xf32>
    %137 = vector.shape_cast %133 : vector<8x128xf32> to vector<1x8x128xf32>
    tpu.vector_store %arg6[%134, %c0_36, %c0_37], %137 {strides = array<i32>} : memref<4x8x128xf32, #tpu.memory_space<vmem>>, vector<1x8x128xf32>,
    %c4_i32 = arith.constant 4 : i32
    %c0_38 = arith.constant 0 : index
    %c0_39 = arith.constant 0 : index
    %138 = vector.load %arg7[%c0_38, %c0_39] : memref<8x128xf32, #tpu.memory_space<vmem>>, vector<8x128xf32>
    tpu.vector_store %arg7[%c0_38, %c0_39], %133 {strides = array<i32>} : memref<8x128xf32, #tpu.memory_space<vmem>>, vector<8x128xf32>,
    return
  }
  func.func @transform_0(%arg0: i32, %arg1: i32) -> (i32, i32, i32) {
    %c0_i32 = arith.constant 0 : i32
    %c0_i32_0 = arith.constant 0 : i32
    return %arg1, %arg0, %c0_i32 : i32, i32, i32
  }
  func.func @transform_1(%arg0: i32, %arg1: i32) -> (i32, i32) {
    %c0_i32 = arith.constant 0 : i32
    %c0_i32_0 = arith.constant 0 : i32
    return %arg0, %c0_i32 : i32, i32
  }
  func.func @transform_2(%arg0: i32, %arg1: i32) -> (i32, i32) {
    %c0_i32 = arith.constant 0 : i32
    %c0_i32_0 = arith.constant 0 : i32
    %c0_i32_1 = arith.constant 0 : i32
    return %c0_i32, %c0_i32_0 : i32, i32
  }
  func.func @transform_3(%arg0: i32, %arg1: i32) -> (i32, i32) {
    %c0_i32 = arith.constant 0 : i32
    %c0_i32_0 = arith.constant 0 : i32
    %c0_i32_1 = arith.constant 0 : i32
    return %c0_i32, %c0_i32_0 : i32, i32
  }
  func.func @transform_4(%arg0: i32, %arg1: i32) -> (i32, i32, i32) {
    %c0_i32 = arith.constant 0 : i32
    %c0_i32_0 = arith.constant 0 : i32
    return %arg1, %arg0, %c0_i32 : i32, i32, i32
  }
}

module attributes {stable_mosaic.version = 11 : i64} {
  func.func @gru_kernel(%arg0: i32, %arg1: i32, %arg2: memref<4x8x384xbf16, #tpu.memory_space<vmem>>, %arg3: memref<8x128xf32, #tpu.memory_space<vmem>>, %arg4: memref<128x256xbf16, #tpu.memory_space<vmem>>, %arg5: memref<128x128xbf16, #tpu.memory_space<vmem>>, %arg6: memref<4x8x128xf32, #tpu.memory_space<vmem>>, %arg7: memref<8x128xf32, #tpu.memory_space<vmem>>) attributes {dimension_semantics = [#tpu.dimension_semantics<parallel>, #tpu.dimension_semantics<arbitrary>], iteration_bounds = array<i64: 1, 2>, scalar_prefetch = 0 : i64, scratch_operands = 1 : i64, tpu.core_type = #tpu.core_type<tc>, window_params = [{transform_indices = @transform_0, window_bounds = array<i64: 4, 8, 384>}, {transform_indices = @transform_1, window_bounds = array<i64: 8, 128>}, {pipeline_mode = #tpu.pipeline_mode<synchronous>, transform_indices = @transform_2, window_bounds = array<i64: 128, 256>}, {pipeline_mode = #tpu.pipeline_mode<synchronous>, transform_indices = @transform_3, window_bounds = array<i64: 128, 128>}, {transform_indices = @transform_4, window_bounds = array<i64: 4, 8, 128>}]} {
    %c0_i32 = arith.constant 0 : i32
    %0 = arith.cmpi eq, %arg1, %c0_i32 : i32
    %1 = arith.extui %0 : i1 to i32
    %c0_i32_0 = arith.constant 0 : i32
    %2 = arith.cmpi ne, %1, %c0_i32_0 : i32
    scf.if %2 {
      %c0_40 = arith.constant 0 : index
      %c0_41 = arith.constant 0 : index
      %139 = vector.load %arg3[%c0_40, %c0_41] : memref<8x128xf32, #tpu.memory_space<vmem>>, vector<8x128xf32>
      %c0_42 = arith.constant 0 : index
      %c0_43 = arith.constant 0 : index
      %140 = vector.load %arg7[%c0_42, %c0_43] : memref<8x128xf32, #tpu.memory_space<vmem>>, vector<8x128xf32>
      tpu.vector_store %arg7[%c0_42, %c0_43], %139 {strides = array<i32>} : memref<8x128xf32, #tpu.memory_space<vmem>>, vector<8x128xf32>,
    } else {
    }
    %c0 = arith.constant 0 : index
    %c0_1 = arith.constant 0 : index
    %3 = vector.load %arg4[%c0, %c0_1] : memref<128x256xbf16, #tpu.memory_space<vmem>>, vector<128x256xbf16>
    %c0_2 = arith.constant 0 : index
    %c0_3 = arith.constant 0 : index
    %4 = vector.load %arg5[%c0_2, %c0_3] : memref<128x128xbf16, #tpu.memory_space<vmem>>, vector<128x128xbf16>
    %c0_4 = arith.constant 0 : index
    %c0_5 = arith.constant 0 : index
    %5 = vector.load %arg7[%c0_4, %c0_5] : memref<8x128xf32, #tpu.memory_space<vmem>>, vector<8x128xf32>
    %c0_i32_6 = arith.constant 0 : i32
    %6 = arith.index_cast %c0_i32_6 : i32 to index
    %c0_7 = arith.constant 0 : index
    %c0_8 = arith.constant 0 : index
    %7 = vector.load %arg2[%6, %c0_7, %c0_8] : memref<4x8x384xbf16, #tpu.memory_space<vmem>>, vector<1x8x384xbf16>
    %8 = vector.shape_cast %7 : vector<1x8x384xbf16> to vector<8x384xbf16>
    %9 = arith.extf %8 : vector<8x384xbf16> to vector<8x384xf32>
    %10 = arith.truncf %5 : vector<8x128xf32> to vector<8x128xbf16>
    %cst = arith.constant dense<0.000000e+00> : vector<8x256xf32>
    %11 = tpu.matmul %10, %3, %cst {dimension_numbers = #tpu.dot_dimension_numbers<[1], [0], [0], [1], [0, 0, 1, 1], [], []>} : vector<8x128xbf16>, vector<128x256xbf16>, vector<8x256xf32> -> vector<8x256xf32>
    %12 = vector.extract_strided_slice %9 {offsets = [0, 0], sizes = [8, 256], strides = [1, 1]} : vector<8x384xf32> to vector<8x256xf32>
    %13 = arith.addf %11, %12 : vector<8x256xf32>
    %14 = vector.extract_strided_slice %13 {offsets = [0, 0], sizes = [8, 128], strides = [1, 1]} : vector<8x256xf32> to vector<8x128xf32>
    %15 = arith.negf %14 : vector<8x128xf32>
    %16 = math.exp %15 : vector<8x128xf32>
    %cst_9 = arith.constant 1.000000e+00 : f32
    %17 = vector.broadcast %cst_9 : f32 to vector<8x128xf32>
    %18 = arith.addf %17, %16 : vector<8x128xf32>
    %19 = arith.divf %17, %18 : vector<8x128xf32>
    %20 = vector.extract_strided_slice %13 {offsets = [0, 128], sizes = [8, 128], strides = [1, 1]} : vector<8x256xf32> to vector<8x128xf32>
    %21 = arith.negf %20 : vector<8x128xf32>
    %22 = math.exp %21 : vector<8x128xf32>
    %cst_10 = arith.constant 1.000000e+00 : f32
    %23 = vector.broadcast %cst_10 : f32 to vector<8x128xf32>
    %24 = arith.addf %23, %22 : vector<8x128xf32>
    %25 = arith.divf %23, %24 : vector<8x128xf32>
    %26 = arith.mulf %25, %5 : vector<8x128xf32>
    %27 = arith.truncf %26 : vector<8x128xf32> to vector<8x128xbf16>
    %cst_11 = arith.constant dense<0.000000e+00> : vector<8x128xf32>
    %28 = tpu.matmul %27, %4, %cst_11 {dimension_numbers = #tpu.dot_dimension_numbers<[1], [0], [0], [1], [0, 0, 1, 1], [], []>} : vector<8x128xbf16>, vector<128x128xbf16>, vector<8x128xf32> -> vector<8x128xf32>
    %29 = vector.extract_strided_slice %9 {offsets = [0, 256], sizes = [8, 128], strides = [1, 1]} : vector<8x384xf32> to vector<8x128xf32>
    %30 = arith.addf %28, %29 : vector<8x128xf32>
    %31 = math.tanh %30 : vector<8x128xf32>
    %32 = arith.subf %31, %5 : vector<8x128xf32>
    %33 = arith.mulf %19, %32 : vector<8x128xf32>
    %34 = arith.addf %5, %33 : vector<8x128xf32>
    %35 = arith.index_cast %c0_i32_6 : i32 to index
    %c0_12 = arith.constant 0 : index
    %c0_13 = arith.constant 0 : index
    %36 = vector.load %arg6[%35, %c0_12, %c0_13] : memref<4x8x128xf32, #tpu.memory_space<vmem>>, vector<1x8x128xf32>
    %37 = vector.shape_cast %36 : vector<1x8x128xf32> to vector<8x128xf32>
    %38 = vector.shape_cast %34 : vector<8x128xf32> to vector<1x8x128xf32>
    tpu.vector_store %arg6[%35, %c0_12, %c0_13], %38 {strides = array<i32>} : memref<4x8x128xf32, #tpu.memory_space<vmem>>, vector<1x8x128xf32>,
    %c1_i32 = arith.constant 1 : i32
    %39 = arith.index_cast %c1_i32 : i32 to index
    %c0_14 = arith.constant 0 : index
    %c0_15 = arith.constant 0 : index
    %40 = vector.load %arg2[%39, %c0_14, %c0_15] : memref<4x8x384xbf16, #tpu.memory_space<vmem>>, vector<1x8x384xbf16>
    %41 = vector.shape_cast %40 : vector<1x8x384xbf16> to vector<8x384xbf16>
    %42 = arith.extf %41 : vector<8x384xbf16> to vector<8x384xf32>
    %43 = arith.truncf %34 : vector<8x128xf32> to vector<8x128xbf16>
    %cst_16 = arith.constant dense<0.000000e+00> : vector<8x256xf32>
    %44 = tpu.matmul %43, %3, %cst_16 {dimension_numbers = #tpu.dot_dimension_numbers<[1], [0], [0], [1], [0, 0, 1, 1], [], []>} : vector<8x128xbf16>, vector<128x256xbf16>, vector<8x256xf32> -> vector<8x256xf32>
    %45 = vector.extract_strided_slice %42 {offsets = [0, 0], sizes = [8, 256], strides = [1, 1]} : vector<8x384xf32> to vector<8x256xf32>
    %46 = arith.addf %44, %45 : vector<8x256xf32>
    %47 = vector.extract_strided_slice %46 {offsets = [0, 0], sizes = [8, 128], strides = [1, 1]} : vector<8x256xf32> to vector<8x128xf32>
    %48 = arith.negf %47 : vector<8x128xf32>
    %49 = math.exp %48 : vector<8x128xf32>
    %cst_17 = arith.constant 1.000000e+00 : f32
    %50 = vector.broadcast %cst_17 : f32 to vector<8x128xf32>
    %51 = arith.addf %50, %49 : vector<8x128xf32>
    %52 = arith.divf %50, %51 : vector<8x128xf32>
    %53 = vector.extract_strided_slice %46 {offsets = [0, 128], sizes = [8, 128], strides = [1, 1]} : vector<8x256xf32> to vector<8x128xf32>
    %54 = arith.negf %53 : vector<8x128xf32>
    %55 = math.exp %54 : vector<8x128xf32>
    %cst_18 = arith.constant 1.000000e+00 : f32
    %56 = vector.broadcast %cst_18 : f32 to vector<8x128xf32>
    %57 = arith.addf %56, %55 : vector<8x128xf32>
    %58 = arith.divf %56, %57 : vector<8x128xf32>
    %59 = arith.mulf %58, %34 : vector<8x128xf32>
    %60 = arith.truncf %59 : vector<8x128xf32> to vector<8x128xbf16>
    %cst_19 = arith.constant dense<0.000000e+00> : vector<8x128xf32>
    %61 = tpu.matmul %60, %4, %cst_19 {dimension_numbers = #tpu.dot_dimension_numbers<[1], [0], [0], [1], [0, 0, 1, 1], [], []>} : vector<8x128xbf16>, vector<128x128xbf16>, vector<8x128xf32> -> vector<8x128xf32>
    %62 = vector.extract_strided_slice %42 {offsets = [0, 256], sizes = [8, 128], strides = [1, 1]} : vector<8x384xf32> to vector<8x128xf32>
    %63 = arith.addf %61, %62 : vector<8x128xf32>
    %64 = math.tanh %63 : vector<8x128xf32>
    %65 = arith.subf %64, %34 : vector<8x128xf32>
    %66 = arith.mulf %52, %65 : vector<8x128xf32>
    %67 = arith.addf %34, %66 : vector<8x128xf32>
    %68 = arith.index_cast %c1_i32 : i32 to index
    %c0_20 = arith.constant 0 : index
    %c0_21 = arith.constant 0 : index
    %69 = vector.load %arg6[%68, %c0_20, %c0_21] : memref<4x8x128xf32, #tpu.memory_space<vmem>>, vector<1x8x128xf32>
    %70 = vector.shape_cast %69 : vector<1x8x128xf32> to vector<8x128xf32>
    %71 = vector.shape_cast %67 : vector<8x128xf32> to vector<1x8x128xf32>
    tpu.vector_store %arg6[%68, %c0_20, %c0_21], %71 {strides = array<i32>} : memref<4x8x128xf32, #tpu.memory_space<vmem>>, vector<1x8x128xf32>,
    %c2_i32 = arith.constant 2 : i32
    %72 = arith.index_cast %c2_i32 : i32 to index
    %c0_22 = arith.constant 0 : index
    %c0_23 = arith.constant 0 : index
    %73 = vector.load %arg2[%72, %c0_22, %c0_23] : memref<4x8x384xbf16, #tpu.memory_space<vmem>>, vector<1x8x384xbf16>
    %74 = vector.shape_cast %73 : vector<1x8x384xbf16> to vector<8x384xbf16>
    %75 = arith.extf %74 : vector<8x384xbf16> to vector<8x384xf32>
    %76 = arith.truncf %67 : vector<8x128xf32> to vector<8x128xbf16>
    %cst_24 = arith.constant dense<0.000000e+00> : vector<8x256xf32>
    %77 = tpu.matmul %76, %3, %cst_24 {dimension_numbers = #tpu.dot_dimension_numbers<[1], [0], [0], [1], [0, 0, 1, 1], [], []>} : vector<8x128xbf16>, vector<128x256xbf16>, vector<8x256xf32> -> vector<8x256xf32>
    %78 = vector.extract_strided_slice %75 {offsets = [0, 0], sizes = [8, 256], strides = [1, 1]} : vector<8x384xf32> to vector<8x256xf32>
    %79 = arith.addf %77, %78 : vector<8x256xf32>
    %80 = vector.extract_strided_slice %79 {offsets = [0, 0], sizes = [8, 128], strides = [1, 1]} : vector<8x256xf32> to vector<8x128xf32>
    %81 = arith.negf %80 : vector<8x128xf32>
    %82 = math.exp %81 : vector<8x128xf32>
    %cst_25 = arith.constant 1.000000e+00 : f32
    %83 = vector.broadcast %cst_25 : f32 to vector<8x128xf32>
    %84 = arith.addf %83, %82 : vector<8x128xf32>
    %85 = arith.divf %83, %84 : vector<8x128xf32>
    %86 = vector.extract_strided_slice %79 {offsets = [0, 128], sizes = [8, 128], strides = [1, 1]} : vector<8x256xf32> to vector<8x128xf32>
    %87 = arith.negf %86 : vector<8x128xf32>
    %88 = math.exp %87 : vector<8x128xf32>
    %cst_26 = arith.constant 1.000000e+00 : f32
    %89 = vector.broadcast %cst_26 : f32 to vector<8x128xf32>
    %90 = arith.addf %89, %88 : vector<8x128xf32>
    %91 = arith.divf %89, %90 : vector<8x128xf32>
    %92 = arith.mulf %91, %67 : vector<8x128xf32>
    %93 = arith.truncf %92 : vector<8x128xf32> to vector<8x128xbf16>
    %cst_27 = arith.constant dense<0.000000e+00> : vector<8x128xf32>
    %94 = tpu.matmul %93, %4, %cst_27 {dimension_numbers = #tpu.dot_dimension_numbers<[1], [0], [0], [1], [0, 0, 1, 1], [], []>} : vector<8x128xbf16>, vector<128x128xbf16>, vector<8x128xf32> -> vector<8x128xf32>
    %95 = vector.extract_strided_slice %75 {offsets = [0, 256], sizes = [8, 128], strides = [1, 1]} : vector<8x384xf32> to vector<8x128xf32>
    %96 = arith.addf %94, %95 : vector<8x128xf32>
    %97 = math.tanh %96 : vector<8x128xf32>
    %98 = arith.subf %97, %67 : vector<8x128xf32>
    %99 = arith.mulf %85, %98 : vector<8x128xf32>
    %100 = arith.addf %67, %99 : vector<8x128xf32>
    %101 = arith.index_cast %c2_i32 : i32 to index
    %c0_28 = arith.constant 0 : index
    %c0_29 = arith.constant 0 : index
    %102 = vector.load %arg6[%101, %c0_28, %c0_29] : memref<4x8x128xf32, #tpu.memory_space<vmem>>, vector<1x8x128xf32>
    %103 = vector.shape_cast %102 : vector<1x8x128xf32> to vector<8x128xf32>
    %104 = vector.shape_cast %100 : vector<8x128xf32> to vector<1x8x128xf32>
    tpu.vector_store %arg6[%101, %c0_28, %c0_29], %104 {strides = array<i32>} : memref<4x8x128xf32, #tpu.memory_space<vmem>>, vector<1x8x128xf32>,
    %c3_i32 = arith.constant 3 : i32
    %105 = arith.index_cast %c3_i32 : i32 to index
    %c0_30 = arith.constant 0 : index
    %c0_31 = arith.constant 0 : index
    %106 = vector.load %arg2[%105, %c0_30, %c0_31] : memref<4x8x384xbf16, #tpu.memory_space<vmem>>, vector<1x8x384xbf16>
    %107 = vector.shape_cast %106 : vector<1x8x384xbf16> to vector<8x384xbf16>
    %108 = arith.extf %107 : vector<8x384xbf16> to vector<8x384xf32>
    %109 = arith.truncf %100 : vector<8x128xf32> to vector<8x128xbf16>
    %cst_32 = arith.constant dense<0.000000e+00> : vector<8x256xf32>
    %110 = tpu.matmul %109, %3, %cst_32 {dimension_numbers = #tpu.dot_dimension_numbers<[1], [0], [0], [1], [0, 0, 1, 1], [], []>} : vector<8x128xbf16>, vector<128x256xbf16>, vector<8x256xf32> -> vector<8x256xf32>
    %111 = vector.extract_strided_slice %108 {offsets = [0, 0], sizes = [8, 256], strides = [1, 1]} : vector<8x384xf32> to vector<8x256xf32>
    %112 = arith.addf %110, %111 : vector<8x256xf32>
    %113 = vector.extract_strided_slice %112 {offsets = [0, 0], sizes = [8, 128], strides = [1, 1]} : vector<8x256xf32> to vector<8x128xf32>
    %114 = arith.negf %113 : vector<8x128xf32>
    %115 = math.exp %114 : vector<8x128xf32>
    %cst_33 = arith.constant 1.000000e+00 : f32
    %116 = vector.broadcast %cst_33 : f32 to vector<8x128xf32>
    %117 = arith.addf %116, %115 : vector<8x128xf32>
    %118 = arith.divf %116, %117 : vector<8x128xf32>
    %119 = vector.extract_strided_slice %112 {offsets = [0, 128], sizes = [8, 128], strides = [1, 1]} : vector<8x256xf32> to vector<8x128xf32>
    %120 = arith.negf %119 : vector<8x128xf32>
    %121 = math.exp %120 : vector<8x128xf32>
    %cst_34 = arith.constant 1.000000e+00 : f32
    %122 = vector.broadcast %cst_34 : f32 to vector<8x128xf32>
    %123 = arith.addf %122, %121 : vector<8x128xf32>
    %124 = arith.divf %122, %123 : vector<8x128xf32>
    %125 = arith.mulf %124, %100 : vector<8x128xf32>
    %126 = arith.truncf %125 : vector<8x128xf32> to vector<8x128xbf16>
    %cst_35 = arith.constant dense<0.000000e+00> : vector<8x128xf32>
    %127 = tpu.matmul %126, %4, %cst_35 {dimension_numbers = #tpu.dot_dimension_numbers<[1], [0], [0], [1], [0, 0, 1, 1], [], []>} : vector<8x128xbf16>, vector<128x128xbf16>, vector<8x128xf32> -> vector<8x128xf32>
    %128 = vector.extract_strided_slice %108 {offsets = [0, 256], sizes = [8, 128], strides = [1, 1]} : vector<8x384xf32> to vector<8x128xf32>
    %129 = arith.addf %127, %128 : vector<8x128xf32>
    %130 = math.tanh %129 : vector<8x128xf32>
    %131 = arith.subf %130, %100 : vector<8x128xf32>
    %132 = arith.mulf %118, %131 : vector<8x128xf32>
    %133 = arith.addf %100, %132 : vector<8x128xf32>
    %134 = arith.index_cast %c3_i32 : i32 to index
    %c0_36 = arith.constant 0 : index
    %c0_37 = arith.constant 0 : index
    %135 = vector.load %arg6[%134, %c0_36, %c0_37] : memref<4x8x128xf32, #tpu.memory_space<vmem>>, vector<1x8x128xf32>
    %136 = vector.shape_cast %135 : vector<1x8x128xf32> to vector<8x128xf32>
    %137 = vector.shape_cast %133 : vector<8x128xf32> to vector<1x8x128xf32>
    tpu.vector_store %arg6[%134, %c0_36, %c0_37], %137 {strides = array<i32>} : memref<4x8x128xf32, #tpu.memory_space<vmem>>, vector<1x8x128xf32>,
    %c4_i32 = arith.constant 4 : i32
    %c0_38 = arith.constant 0 : index
    %c0_39 = arith.constant 0 : index
    %138 = vector.load %arg7[%c0_38, %c0_39] : memref<8x128xf32, #tpu.memory_space<vmem>>, vector<8x128xf32>
    tpu.vector_store %arg7[%c0_38, %c0_39], %133 {strides = array<i32>} : memref<8x128xf32, #tpu.memory_space<vmem>>, vector<8x128xf32>,
    return
  }
  func.func @transform_0(%arg0: i32, %arg1: i32) -> (i32, i32, i32) {
    %c0_i32 = arith.constant 0 : i32
    %c0_i32_0 = arith.constant 0 : i32
    return %arg1, %arg0, %c0_i32 : i32, i32, i32
  }
  func.func @transform_1(%arg0: i32, %arg1: i32) -> (i32, i32) {
    %c0_i32 = arith.constant 0 : i32
    %c0_i32_0 = arith.constant 0 : i32
    return %arg0, %c0_i32 : i32, i32
  }
  func.func @transform_2(%arg0: i32, %arg1: i32) -> (i32, i32) {
    %c0_i32 = arith.constant 0 : i32
    %c0_i32_0 = arith.constant 0 : i32
    %c0_i32_1 = arith.constant 0 : i32
    return %c0_i32, %c0_i32_0 : i32, i32
  }
  func.func @transform_3(%arg0: i32, %arg1: i32) -> (i32, i32) {
    %c0_i32 = arith.constant 0 : i32
    %c0_i32_0 = arith.constant 0 : i32
    %c0_i32_1 = arith.constant 0 : i32
    return %c0_i32, %c0_i32_0 : i32, i32
  }
  func.func @transform_4(%arg0: i32, %arg1: i32) -> (i32, i32, i32) {
    %c0_i32 = arith.constant 0 : i32
    %c0_i32_0 = arith.constant 0 : i32
    return %arg1, %arg0, %c0_i32 : i32, i32, i32
  }
}

</mosaic_0001>

<bundles_post_ra>
// kernel: tpu_custom_call.1
= control target key start
LH: loop header
LB: loop body
LE: loop exit
PB: predicated region body
PF: predicated region fallthrough
CT: control target
= control target key end

     0   :  { %9 = vsyncpa [#allocation4], 0  ;;  %s2125_s0 = inlined_call_operand.hbm [shape: bf16[8,8,384], index: 0, kind: input, shape index: {}]   ;;  %s2126_s1 = inlined_call_operand.hbm [shape: f32[8,128], index: 1, kind: input, shape index: {}]   ;;  %s2127_s2 = inlined_call_operand.hbm [shape: bf16[128,256], index: 2, kind: input, shape index: {}]   ;;  %s2128_s3 = inlined_call_operand.hbm [shape: bf16[128,128], index: 3, kind: input, shape index: {}]   ;;  %s2129_s4 = inlined_call_operand.hbm [shape: f32[8,8,128], index: 4, kind: output, shape index: {}]  }
   0x1   :  { %11 = vsyncpa [#allocation4 + $0x1], 0 }
   0x2   :  { %12 = vsyncpa [#allocation7], 0 }
   0x3   :  { %13 = vsyncpa [#allocation10], 0 }
   0x4   :  { %14 = vsyncpa [#allocation5], 0 }
   0x5   :  { %16 = vsyncpa [#allocation5 + $0x1], 0  ;;  %s1622_s15 = smov 0   ;;  %s1624_s16 = smov 0  }
   0x6   :  { %s1626_s17 = smov 0   ;;  %s1628_s18 = smov 0  }
   0x7   :  { %s1630_s19 = smov 0   ;;  %s1632_s20 = smov 0  }
   0x8 LB: > { %s1017_s21 = sadd.s32 4294967295, %s1579_s20   ;;  %s1018_s22 = sadd.s32 4294967294, %s1579_s20   ;;  %s1579_s20 = sphi %s1632_s20, %s22_s20   ;;  %s1575_s19 = sphi %s1630_s19, %s2153_s19   ;;  %s1571_s18 = sphi %s1628_s18, %s2152_s18   ;;  %s1567_s17 = sphi %s1626_s17, %s2151_s17   ;;  %s1563_s16 = sphi %s1624_s16, %s2150_s16   ;;  %s1559_s15 = sphi %s1622_s15, %s2149_s15  }
   0x9   : > { %p56_p0 = scmp.ne.s32.totalorder %s1563_s16, %s1559_s15  ;;  %p1656_p1 = scmp.eq.s32.totalorder %s1017_s21, 0 }
   0xa   : > { %p1660_p2 = scmp.eq.s32.totalorder %s1017_s21, 1  ;;  %p156_p3 = scmp.eq.s32.totalorder %s1018_s22, 1 }
   0xb   : > { %s2134_s23 = scalar_select %p1656_p1, 1, 0 }
   0xc   : > { %s2135_s24 = scalar_select %p1660_p2, 1, 0 }
   0xd   : > { %p1666_p4 = por %p1656_p1, %p56_p0  ;;  %p1019_p5 = scmp.ge.s32.totalorder %s1579_s20, 1 }
   0xe   : > { %p1671_p6 = por %p156_p3, %p56_p0  ;;  %p163_p7 = scmp.lt.s32.totalorder %s1579_s20, 3 }
   0xf   : > { %s2136_s25 = scalar_select %p1666_p4, 1, 0 }
  0x10   : > { %s2137_s26 = scalar_select %p1671_p6, 1, 0 }
  0x11   : > { %p1676_p8 = pnand %p1019_p5, %p163_p7  ;;  %s1581_s28 = smov [#allocation6]  }
  0x12   : > { %s178_s29 = sshll.u32 %s1581_s28, 4  ;;  %s1582_s30 = smov [#allocation8]   ;;  %s179_s29 = int_to_ptr.vmem [resolvable:$true] %s178_s29 }
  0x13   : > { %s2138_s27 = scalar_select %p1676_p8, 1, 0 }
  0x14   : > { %p1215_p10 = pneg %p1676_p8  ;;  %s188_s5 = sshll.u32 %s1582_s30, 4  ;;  %s1689_s5 = int_to_ptr.vmem [resolvable:$true] %s188_s5 }
  0x15   : > { %s1583_s7 = smov [#allocation9]   ;;  %s1375_s11 = scalar_lea.hbm %s2126_s1, 128 }
  0x16   : > { %p1685_p11 = pnand %p1215_p10, %p1656_p1  ;;  %s1691_s8 = sshll.u32 %s1583_s7, 4  ;;  %s202_s8 = int_to_ptr.vmem [resolvable:$true] %s1691_s8 }
  0x17   : > { %p1376_p12 = scmp.ne.s32.totalorder %s2126_s1, %s1375_s11  ;;  %p1382_p5 = scmp.lt.u32.totalorder %s1375_s11, %s2126_s1 }
  0x18   : > { %p1701_p13 = pneg %p1685_p11 }
  0x1a   : > { %p1378_p0 = pnand %p1701_p13, %p1376_p12 }
  0x1c   : > { %p1379_p3 = pneg %p1378_p0 }
  0x1e   : > { %p1384_p7 = pnand %p1382_p5, %p1379_p3 }
  0x20   : > { %1387 = shalt.err (!%p1384_p7)
}
  0x21   : > { %s1388_s28 = scalar_lea.vmem %s179_s29, 128  ;;  %p1396_p1 = scmp.lt.s32.totalorder %s179_s29, %s179_s29 }
  0x22   : > { %p1389_p10 = scmp.ne.s32.totalorder %s179_s29, %s1388_s28  ;;  %p1397_p4 = scmp.lt.s32.totalorder %s1388_s28, %s1388_s28 }
  0x24   : > { %p1391_p9 = pnand %p1389_p10, %p1701_p13  ;;  %p1398_p8 = por %p1397_p4, %p1396_p1 }
  0x26   : > { %p1392_p6 = pneg %p1391_p9 }
  0x28   : > { %p1399_p2 = pnand %p1398_p8, %p1392_p6 }
  0x2a   : > { %1402 = shalt.err (!%p1399_p2)
}
  0x2b   : > { %1218 = dma.hbm_to_vmem [thread:$0]  (!%p1685_p11), %s2126_s1, 128, %s179_s29, [#allocation7]  }
  0x2c   : > { %s1403_s11 = scalar_lea.hbm %s2127_s2, 2048 }
  0x2d   : > { %p1404_p9 = scmp.ne.s32.totalorder %s2127_s2, %s1403_s11  ;;  %p1410_p2 = scmp.lt.u32.totalorder %s1403_s11, %s2127_s2 }
  0x2f   : > { %p1406_p12 = pnand %p1404_p9, %p1701_p13 }
  0x31   : > { %p1407_p1 = pneg %p1406_p12 }
  0x33   : > { %p1412_p4 = pnand %p1410_p2, %p1407_p1 }
  0x35   : > { %1415 = shalt.err (!%p1412_p4)
}
  0x36   : > { %s1416_s29 = scalar_lea.vmem %s1689_s5, 2048  ;;  %p1424_p3 = scmp.lt.s32.totalorder %s1689_s5, %s1689_s5 }
  0x37   : > { %p1417_p6 = scmp.ne.s32.totalorder %s1689_s5, %s1416_s29  ;;  %p1425_p5 = scmp.lt.s32.totalorder %s1416_s29, %s1416_s29 }
  0x39   : > { %p1419_p8 = pnand %p1417_p6, %p1701_p13  ;;  %p1426_p7 = por %p1425_p5, %p1424_p3 }
  0x3b   : > { %p1420_p0 = pneg %p1419_p8 }
  0x3d   : > { %p1427_p10 = pnand %p1426_p7, %p1420_p0 }
  0x3f   : > { %1430 = shalt.err (!%p1427_p10)
}
  0x40   : > { %s1584_s28 = smov 128   ;;  %s1585_s30 = smov 8  }
  0x41   : > { %1221 = dma.hbm_to_vmem [thread:$0]  (!%p1685_p11), %s2127_s2, 2048, %s1689_s5, [#allocation7], %s1584_s28, %s1584_s28, %s1585_s30  }
  0x42   : > { %s1431_s12 = scalar_lea.hbm %s2128_s3, 1024 }
  0x43   : > { %p1432_p9 = scmp.ne.s32.totalorder %s2128_s3, %s1431_s12  ;;  %p1438_p2 = scmp.lt.u32.totalorder %s1431_s12, %s2128_s3 }
  0x45   : > { %p1434_p12 = pnand %p1432_p9, %p1701_p13 }
  0x47   : > { %p1435_p1 = pneg %p1434_p12 }
  0x49   : > { %p1440_p4 = pnand %p1438_p2, %p1435_p1 }
  0x4b   : > { %1443 = shalt.err (!%p1440_p4)
}
  0x4c   : > { %s1444_s7 = scalar_lea.vmem %s202_s8, 1024  ;;  %p1452_p3 = scmp.lt.s32.totalorder %s202_s8, %s202_s8 }
  0x4d   : > { %p1445_p6 = scmp.ne.s32.totalorder %s202_s8, %s1444_s7  ;;  %p1453_p5 = scmp.lt.s32.totalorder %s1444_s7, %s1444_s7 }
  0x4f   : > { %p1447_p8 = pnand %p1445_p6, %p1701_p13  ;;  %p1454_p7 = por %p1453_p5, %p1452_p3 }
  0x51   : > { %p1448_p0 = pneg %p1447_p8 }
  0x53   : > { %p1455_p10 = pnand %p1454_p7, %p1448_p0 }
  0x55   : > { %1458 = shalt.err (!%p1455_p10)
}
  0x56   : > { %s1586_s5 = smov 64   ;;  %s1587_s14 = smov 4  }
  0x57   : > { %1224 = dma.hbm_to_vmem [thread:$0]  (!%p1685_p11), %s2128_s3, 1024, %s202_s8, [#allocation10], %s1586_s5, %s1586_s5, %s1587_s14  }
  0x58   : > { %s43_s9 = sadd.s32 1, %s1567_s17  ;;  %s31_s10 = sadd.s32 1, %s1575_s19 }
  0x59   : > { %p50_p13 = scmp.ne.s32.totalorder %s1567_s17, %s1563_s16  ;;  %p32_p9 = scmp.ge.s32.totalorder %s31_s10, 2 }
  0x5a   : > { %p51_p12 = scmp.eq.s32.totalorder %s1579_s20, 0  ;;  %p2141_p1 = scmp.ne.s32.totalorder %s2135_s24, 0 }
  0x5b   : > { %p1236_p4 = scmp.lt.s32.totalorder %s1579_s20, 2  ;;  %s2155_s10 = smov (%p32_p9, %s31_s10), 0 }
  0x5c   : > { %p1766_p2 = por %p2141_p1, %p50_p13  ;;  %p52_p6 = por %p51_p12, %p50_p13 }
  0x5d   : > { %s215_s6 = sand.u32 1, %s1567_s17   ;;  %s38_s12 = ssub.s32 %s1575_s19, %s2155_s10 }
  0x5e   : > { %p41_p8 = scmp.eq.s32.totalorder %s38_s12, 0  ;;  %s1196_s8 = smul.u32 48, %s215_s6 }
  0x5f   : > { %s1197_s13 = smul.u32 768, %s1575_s19  ;;  %p1777_p11 = pnand %p1236_p4, %p52_p6 }
  0x60   : > { %s1782_s24 = scalar_select %p41_p8, %s1567_s17, %s43_s9  }
  0x61   : > { %s1787_s7 = scalar_lea.hbm %s2125_s0, %s1197_s13  ;;  %s219_s5 = scalar_lea.vmem [#allocation3], %s1196_s8 }
  0x62   : > { %s229_s14 = sshll.u32 %s219_s5, 4  ;;  %s1791_s28 = scalar_lea.sflag [#allocation4], %s215_s6  ;;  %s1789_s14 = int_to_ptr.vmem [resolvable:$true] %s229_s14 }
  0x63   : > { %s1459_s30 = scalar_lea.hbm %s1787_s7, 768  ;;  %p1461_p3 = pneg %p1777_p11 }
  0x64   : > { %p1460_p0 = scmp.ne.s32.totalorder %s1787_s7, %s1459_s30  ;;  %s1464_s13 = scalar_lea.hbm %s2125_s0, 1536 }
  0x65   : > { %p1465_p10 = scmp.lt.u32.totalorder %s1787_s7, %s2125_s0  ;;  %p1466_p13 = scmp.lt.u32.totalorder %s1464_s13, %s1459_s30 }
  0x66   : > { %p1462_p5 = pnand %p1461_p3, %p1460_p0  ;;  %p1468_p12 = scmp.lt.u32.totalorder %s1459_s30, %s1787_s7 }
  0x67   : > { %p1467_p9 = por %p1466_p13, %p1465_p10 }
  0x68   : > { %p1463_p7 = pneg %p1462_p5 }
  0x69   : > { %p1469_p1 = por %p1468_p12, %p1467_p9 }
  0x6b   : > { %p1470_p4 = pnand %p1469_p1, %p1463_p7 }
  0x6d   : > { %1473 = shalt.err (!%p1470_p4)
}
  0x6e   : > { %s1474_s6 = scalar_lea.vmem %s1789_s14, 768  ;;  %s1588_s8 = smov [#allocation3]  }
  0x6f   : > { %p1475_p6 = scmp.ne.s32.totalorder %s1789_s14, %s1474_s6  ;;  %s1479_s5 = sshll.u32 %s1588_s8, 4  ;;  %s1480_s5 = int_to_ptr.vmem [resolvable:$false] %s1479_s5 }
  0x70   : > { %s1481_s9 = scalar_lea.vmem %s1480_s5, 1536  ;;  %p1482_p5 = scmp.lt.s32.totalorder %s1789_s14, %s1480_s5 }
  0x71   : > { %p1477_p8 = pnand %p1475_p6, %p1461_p3  ;;  %p1483_p10 = scmp.lt.s32.totalorder %s1481_s9, %s1474_s6 }
  0x73   : > { %p1478_p0 = pneg %p1477_p8  ;;  %p1484_p13 = por %p1483_p10, %p1482_p5 }
  0x75   : > { %p1485_p9 = pnand %p1484_p13, %p1478_p0 }
  0x77   : > { %1488 = shalt.err (!%p1485_p9)
}
  0x78   : > { %s1589_s30 = smov 192   ;;  %s1590_s12 = smov 12  }
  0x79   : > { %1228 = dma.hbm_to_vmem [thread:$0]  (!%p1777_p11), %s1787_s7, 768, %s1789_s14, %s1791_s28, %s1589_s30, %s1589_s30, %s1590_s12  }
  0x7a   : > { %p2144_p3 = scmp.ne.s32.totalorder %s2138_s27, 0 }
  0x7b   : > { %s1822_s13 = sand.u32 (!%p2144_p3), 1, %s1563_s16   ;;  %p2145_p7 = scmp.ne.s32.totalorder (!%p2144_p3), %s2136_s25, 0 }
  0x7c   : > { %241 = sbr.rel (%p2144_p3) target bundleno = 2104 (0x838), region = 36  ;;  %s244_s29 = scalar_lea.sflag (!%p2144_p3), [#allocation4], %s1822_s13 }
  0x7d   : > { %s1198_s22 = smul.u32 (!%p2144_p3), 48, %s1822_s13 }
  0x7f   : > { %s1826_s6 = scalar_lea.vmem (!%p2144_p3), [#allocation3], %s1198_s22 }
  0x83   : > { %1542 = dma.done.wait (%p2145_p7), %s244_s29, 768  }
  0x84   : > { %1544 = vsyncadd (%p2145_p7), %s244_s29, 4294966528  ;;  %p2146_p11 = scmp.ne.s32.totalorder %s2134_s23, 0 }
  0x86   : > { %1546 = dma.done.wait (%p2146_p11), [#allocation7], 2176  }
  0x87   : > { %1548 = vsyncadd (%p2146_p11), [#allocation7], 4294965120 }
  0x88   : > { %1550 = dma.done.wait (%p2146_p11), [#allocation10], 1024  }
  0x89   : > { %1552 = vsyncadd (%p2146_p11), [#allocation10], 4294966272  ;;  %s1031_s27 = sshll.u32 %s1822_s13, 5  ;;  %p1032_p12 = scmp.ne.s32.totalorder %s1571_s18, 0 }
  0x8a   : > { %s1841_s21 = scalar_lea.vmem [#allocation11], %s1031_s27  ;;  %v291_v0 = vld [vmem:[#allocation6] sm:$0xff] (!%p1032_p12) }
  0x8b   : > { %290 = sbr.rel (%p1032_p12) target bundleno = 146 (0x92), region = 56  ;;  %292 = vst [vmem:[#allocation2] sm:$0xff] (!%p1032_p12), %v291_v0 }
  0x92 PF: > { %v1844_v1 = vld [vmem:[#allocation8 + $0x4] ss:$8 sps:$4 sm:$0xff]   ;;  %v1846_v2 = vld [vmem:[#allocation8] ss:$8 sps:$4 sm:$0xff]   ;;  %v1591_v3 = vmov 0   ;;  %v1891_v18 = vld [vmem:[#allocation2] sm:$0xff] }
  0x93   : > { %444 = vmatprep.mubr.bf16.mxu0 %v1591_v3  ;;  %412 = vmatprep.subr.bf16.mxu0 %v1844_v1  ;;  %v1850_v4 = vld [vmem:[#allocation8 + $0x14] ss:$8 sps:$4 sm:$0xff]   ;;  %v1853_v5 = vld [vmem:[#allocation8 + $0x10] ss:$8 sps:$4 sm:$0xff]   ;;  %v1856_v6 = vld [vmem:[#allocation8 + $0x24] ss:$8 sps:$4 sm:$0xff]   ;;  %v331_v19 = vpack.c.bf16 %v1891_v18, %v1891_v18 }
  0x94   : > { %413 = vmatpush1.bf16.msra.mxu0 %v1846_v2  ;;  %v1859_v7 = vld [vmem:[#allocation8 + $0x20] ss:$8 sps:$4 sm:$0xff]   ;;  %v1862_v8 = vld [vmem:[#allocation8 + $0x34] ss:$8 sps:$4 sm:$0xff]   ;;  %v1864_v9 = vld [vmem:[#allocation8 + $0x30] ss:$8 sps:$4 sm:$0xff]  }
  0x95   : > { %414 = vmatprep.subr.bf16.mxu0 %v1850_v4  ;;  %v1867_v10 = vld [vmem:[#allocation8 + $0x44] ss:$8 sps:$4 sm:$0xff]   ;;  %v1870_v11 = vld [vmem:[#allocation8 + $0x40] ss:$8 sps:$4 sm:$0xff]   ;;  %v1874_v12 = vld [vmem:[#allocation8 + $0x54] ss:$8 sps:$4 sm:$0xff]  }
  0x96   : > { %v1877_v13 = vld [vmem:[#allocation8 + $0x50] ss:$8 sps:$4 sm:$0xff]   ;;  %v1880_v14 = vld [vmem:[#allocation8 + $0x64] ss:$8 sps:$4 sm:$0xff]   ;;  %v1883_v15 = vld [vmem:[#allocation8 + $0x60] ss:$8 sps:$4 sm:$0xff]  }
  0x97   : > { %v1886_v16 = vld [vmem:[#allocation8 + $0x74] ss:$8 sps:$4 sm:$0xff]   ;;  %v1889_v17 = vld [vmem:[#allocation8 + $0x70] ss:$8 sps:$4 sm:$0xff]   ;;  %v1915_v20 = vld [vmem:[#allocation9] sm:$0xff]   ;;  %v1592_v21 = vmov 0.0  }
  0x98   : > { %415 = vmatpush1.bf16.msra.mxu0 %v1853_v5  ;;  %1116 = vmatprep.subr.bf16.mxu1 %v1592_v21  ;;  %v1920_v22 = vld [vmem:[#allocation9 + $0x8] sm:$0xff]   ;;  %v1924_v23 = vld [vmem:[#allocation9 + $0x10] sm:$0xff]   ;;  %v1928_v24 = vld [vmem:[#allocation9 + $0x18] sm:$0xff]   ;;  %vm1593_vm0 = vmmov 0   ;;  %s1079_s23 = sshll.u32 %s1571_s18, 9  ;;  %s900_s25 = sshll.u32 %s1841_s21, 4  ;;  %s2075_s25 = int_to_ptr.vmem [resolvable:$true] %s900_s25 }
  0x99   : > { %416 = vmatprep.subr.bf16.mxu0 %v1856_v6  ;;  %1117 = vmatpush3.bf16.msra.mxu1 %v1915_v20  ;;  %v1932_v25 = vld [vmem:[#allocation9 + $0x20] sm:$0xff]   ;;  %v1935_v26 = vld [vmem:[#allocation9 + $0x28] sm:$0xff]   ;;  %v1941_v27 = vld [vmem:[#allocation9 + $0x30] sm:$0xff]   ;;  %s2073_s28 = scalar_lea.hbm %s2129_s4, %s1079_s23  ;;  %s886_s8 = scalar_lea.sflag [#allocation5], %s1822_s13 }
  0x9a   : > { %1118 = vmatprep.subr.bf16.mxu1 %v1592_v21  ;;  %1132 = vmatprep.mubr.msk.bf16.mxu1 %vm1593_vm0, %v1592_v21  ;;  %v1945_v28 = vld [vmem:[#allocation9 + $0x38] sm:$0xff]   ;;  %s1489_s5 = scalar_lea.vmem %s2075_s25, 512  ;;  %s1594_s18 = smov [#allocation11]  }
  0x9b   : > { %v326_v29 = vld [vmem:[%s1826_s6] sm:$0xff]  ;;  %v1971_v45 = vld [vmem:[%s1826_s6 + $0x8] ss:$12 sps:$4 sm:$0xff]   ;;  %v1059_v60 = vld [vmem:[%s1826_s6 + $0xc] sm:$0xff]  ;;  %p1490_p1 = scmp.ne.s32.totalorder %s2075_s25, %s1489_s5  ;;  %s1493_s9 = sshll.u32 %s1594_s18, 4  ;;  %s1494_s9 = int_to_ptr.vmem [resolvable:$false] %s1493_s9 }
  0x9c   : > { %417 = vmatpush1.bf16.msra.mxu0 %v1859_v7  ;;  %v329_v30 = vunpack.c.h.bf16 %v326_v29  ;;  %v328_v42 = vunpack.c.l.bf16 %v326_v29  ;;  %v330_v46 = vunpack.c.l.bf16 %v1971_v45  ;;  %v564_v61 = vunpack.c.h.bf16 %v1059_v60  ;;  %s1495_s30 = scalar_lea.vmem %s1494_s9, 1024  ;;  %p1496_p8 = scmp.lt.s32.totalorder %s2075_s25, %s1494_s9 }
  0x9d   : > { %418 = vmatprep.subr.bf16.mxu0 %v1862_v8  ;;  %1119 = vmatpush3.bf16.msra.mxu1 %v1920_v22  ;;  %p1491_p4 = pnand %p1490_p1, %p1766_p2  ;;  %p1497_p0 = scmp.lt.s32.totalorder %s1495_s30, %s1489_s5 }
  0x9e   : > { %1120 = vmatprep.subr.bf16.mxu1 %v1592_v21 }
  0x9f   : > { %p1492_p6 = pneg %p1491_p4  ;;  %p1498_p5 = por %p1497_p0, %p1496_p8 }
  0xa0   : > { %419 = vmatpush1.bf16.msra.mxu0 %v1864_v9 }
  0xa1   : > { %420 = vmatprep.subr.bf16.mxu0 %v1867_v10  ;;  %1121 = vmatpush3.bf16.msra.mxu1 %v1924_v23  ;;  %p1499_p10 = pnand %p1498_p5, %p1492_p6 }
  0xa2   : > { %1122 = vmatprep.subr.bf16.mxu1 %v1592_v21 }
  0xa4   : > { %421 = vmatpush1.bf16.msra.mxu0 %v1870_v11 }
  0xa5   : > { %422 = vmatprep.subr.bf16.mxu0 %v1874_v12  ;;  %1123 = vmatpush3.bf16.msra.mxu1 %v1928_v24 }
  0xa6   : > { %1124 = vmatprep.subr.bf16.mxu1 %v1592_v21 }
  0xa8   : > { %423 = vmatpush1.bf16.msra.mxu0 %v1877_v13 }
  0xa9   : > { %424 = vmatprep.subr.bf16.mxu0 %v1880_v14  ;;  %1125 = vmatpush3.bf16.msra.mxu1 %v1932_v25 }
  0xaa   : > { %1126 = vmatprep.subr.bf16.mxu1 %v1592_v21 }
  0xac   : > { %425 = vmatpush1.bf16.msra.mxu0 %v1883_v15 }
  0xad   : > { %426 = vmatprep.subr.bf16.mxu0 %v1886_v16  ;;  %1127 = vmatpush3.bf16.msra.mxu1 %v1935_v26 }
  0xae   : > { %1128 = vmatprep.subr.bf16.mxu1 %v1592_v21 }
  0xb0   : > { %427 = vmatpush1.bf16.msra.mxu0 %v1889_v17 }
  0xb1   : > { %567 = vmatprep.subr.bf16.mxu0 %v1844_v1  ;;  %1129 = vmatpush3.bf16.msra.mxu1 %v1941_v27 }
  0xb2   : > { %1130 = vmatprep.subr.bf16.mxu1 %v1592_v21 }
  0xb3   : > { %445 = vmatmul.mubr.bf16.vlgmr.msra.gmra.mrb[0].mxu0 %v331_v19 }
  0xb4   : > { %568 = vmatpush1.bf16.msra.mxu0 %v1846_v2  ;;  %599 = vmatprep.mubr.bf16.mxu0 %v1591_v3 }
  0xb5   : > { %569 = vmatprep.subr.bf16.mxu0 %v1850_v4  ;;  %1131 = vmatpush3.bf16.msra.mxu1 %v1945_v28 }
  0xb6   : > { %1136 = vmatprep.subr.bf16.mxu1 %v1592_v21 }
  0xb8   : > { %570 = vmatpush1.bf16.msra.mxu0 %v1853_v5 }
  0xb9   : > { %571 = vmatprep.subr.bf16.mxu0 %v1856_v6 }
  0xbc   : > { %572 = vmatpush1.bf16.msra.mxu0 %v1859_v7 }
  0xbd   : > { %573 = vmatprep.subr.bf16.mxu0 %v1862_v8 }
  0xc0   : > { %574 = vmatpush1.bf16.msra.mxu0 %v1864_v9 }
  0xc1   : > { %575 = vmatprep.subr.bf16.mxu0 %v1867_v10 }
  0xc4   : > { %576 = vmatpush1.bf16.msra.mxu0 %v1870_v11 }
  0xc5   : > { %577 = vmatprep.subr.bf16.mxu0 %v1874_v12 }
  0xc8   : > { %578 = vmatpush1.bf16.msra.mxu0 %v1877_v13 }
  0xc9   : > { %579 = vmatprep.subr.bf16.mxu0 %v1880_v14 }
  0xcc   : > { %580 = vmatpush1.bf16.msra.mxu0 %v1883_v15 }
  0xcd   : > { %581 = vmatprep.subr.bf16.mxu0 %v1886_v16 }
  0xd0   : > { %582 = vmatpush1.bf16.msra.mxu0 %v1889_v17 }
  0xd1   : > { %675 = vmatprep.subr.bf16.mxu0 %v1844_v1 }
 0x186   : > { %v446_v31 = vpop.f32.mrb[0].mxu0 }
 0x187   : > { %v448_v32 = vpop.f32.mrb[1].mxu0  ;;  %v447_v43 = vadd.f32 %v446_v31, %v328_v42 }
 0x188   : > { %v449_v33 = vadd.f32 %v448_v32, %v329_v30  ;;  %v450_v34 = vpop.f32.mrb[2].mxu0 }
 0x189   : > { %v451_v35 = vpop.f32.mrb[3].mxu0  ;;  %v1049_v44 = vmul.f32 -1.442695, %v447_v43 }
 0x18a   : > { %v1050_v36 = vmul.f32 -1.442695, %v449_v33 }
 0x18c   : > { %1335 = vpow2.f32 %v1050_v36 }
 0x196   : > { %v1336_v37 = vpop.eup %1335 }
 0x197   : > { %v462_v38 = vadd.f32 1.0, %v1336_v37  ;;  %v565_v37 = vunpack.c.h.bf16 %v1971_v45 }
 0x199   : > { %1337 = vrcp.f32 %v462_v38 }
 0x19a   : > { %1339 = vpow2.f32 %v1049_v44 }
 0x1a3   : > { %v1338_v39 = vpop.eup %1337 }
 0x1a4   : > { %v465_v40 = vmul.f32 %v1338_v39, %v1891_v18  ;;  %v1340_v47 = vpop.eup %1339 }
 0x1a5   : > { %v456_v49 = vadd.f32 1.0, %v1340_v47 }
 0x1a6   : > { %v466_v41 = vpack.c.bf16 %v465_v40, %v465_v40 }
 0x1a8   : > { %1133 = vmatmul.mubr.bf16.vlgmr.msra.gmra.mrb[0].mxu1 %v466_v41 }
 0x1a9   : > { %1137 = vmatpush3.bf16.msra.mxu1 %v1915_v20  ;;  %1152 = vmatprep.mubr.msk.bf16.mxu1 %vm1593_vm0, %v1592_v21 }
 0x1aa   : > { %1138 = vmatprep.subr.bf16.mxu1 %v1592_v21 }
 0x1ad   : > { %1139 = vmatpush3.bf16.msra.mxu1 %v1920_v22 }
 0x1ae   : > { %1140 = vmatprep.subr.bf16.mxu1 %v1592_v21 }
 0x1b1   : > { %1141 = vmatpush3.bf16.msra.mxu1 %v1924_v23 }
 0x1b2   : > { %1142 = vmatprep.subr.bf16.mxu1 %v1592_v21 }
 0x1b5   : > { %1143 = vmatpush3.bf16.msra.mxu1 %v1928_v24 }
 0x1b6   : > { %1144 = vmatprep.subr.bf16.mxu1 %v1592_v21 }
 0x1b9   : > { %1145 = vmatpush3.bf16.msra.mxu1 %v1932_v25 }
 0x1ba   : > { %1146 = vmatprep.subr.bf16.mxu1 %v1592_v21 }
 0x1bd   : > { %1147 = vmatpush3.bf16.msra.mxu1 %v1935_v26 }
 0x1be   : > { %1148 = vmatprep.subr.bf16.mxu1 %v1592_v21 }
 0x1c1   : > { %1149 = vmatpush3.bf16.msra.mxu1 %v1941_v27 }
 0x1c2   : > { %1150 = vmatprep.subr.bf16.mxu1 %v1592_v21 }
 0x1c5   : > { %1151 = vmatpush3.bf16.msra.mxu1 %v1945_v28 }
 0x1c6   : > { %1156 = vmatprep.subr.bf16.mxu1 %v1592_v21 }
 0x27b   : > { %v549_v48 = vpop.f32.mrb[0].mxu1 }
 0x27c   : > { %v550_v50 = vadd.f32 %v549_v48, %v330_v46  ;;  %v1134_v51 = vpop.f32.mrb[1].mxu1 }
 0x27d   : > { %v552_v52 = vpop.f32.mrb[2].mxu1 }
 0x27e   : > { %1341 = vtanh.f32 %v550_v50  ;;  %v1135_v53 = vpop.f32.mrb[3].mxu1 }
 0x27f   : > { %1343 = vrcp.f32 %v456_v49 }
 0x288   : > { %v1342_v54 = vpop.eup %1341 }
 0x289   : > { %v556_v55 = vsub.f32 %v1342_v54, %v1891_v18  ;;  %v1344_v56 = vpop.eup %1343 }
 0x28b   : > { %v557_v57 = vmul.f32 %v1344_v56, %v556_v55 }
 0x28d   : > { %v1976_v58 = vadd.f32 %v557_v57, %v1891_v18  ;;  %v1069_v57 = vld [vmem:[%s1826_s6 + $0x24] sm:$0xff] }
 0x28f   : > { %559 = vst [vmem:[%s1841_s21] sm:$0xff] %v1976_v58  ;;  %v566_v59 = vpack.c.bf16 %v1976_v58, %v1976_v58 }
 0x291   : > { %600 = vmatmul.mubr.bf16.vlgmr.msra.gmra.mrb[4].mxu0 %v566_v59 }
 0x292   : > { %676 = vmatpush1.bf16.msra.mxu0 %v1846_v2  ;;  %707 = vmatprep.mubr.bf16.mxu0 %v1591_v3 }
 0x293   : > { %677 = vmatprep.subr.bf16.mxu0 %v1850_v4 }
 0x296   : > { %678 = vmatpush1.bf16.msra.mxu0 %v1853_v5 }
 0x297   : > { %679 = vmatprep.subr.bf16.mxu0 %v1856_v6 }
 0x29a   : > { %680 = vmatpush1.bf16.msra.mxu0 %v1859_v7 }
 0x29b   : > { %681 = vmatprep.subr.bf16.mxu0 %v1862_v8 }
 0x29e   : > { %682 = vmatpush1.bf16.msra.mxu0 %v1864_v9 }
 0x29f   : > { %683 = vmatprep.subr.bf16.mxu0 %v1867_v10 }
 0x2a2   : > { %684 = vmatpush1.bf16.msra.mxu0 %v1870_v11 }
 0x2a3   : > { %685 = vmatprep.subr.bf16.mxu0 %v1874_v12 }
 0x2a6   : > { %686 = vmatpush1.bf16.msra.mxu0 %v1877_v13 }
 0x2a7   : > { %687 = vmatprep.subr.bf16.mxu0 %v1880_v14 }
 0x2aa   : > { %688 = vmatpush1.bf16.msra.mxu0 %v1883_v15 }
 0x2ab   : > { %689 = vmatprep.subr.bf16.mxu0 %v1886_v16 }
 0x2ae   : > { %690 = vmatpush1.bf16.msra.mxu0 %v1889_v17 }
 0x2af   : > { %783 = vmatprep.subr.bf16.mxu0 %v1844_v1  ;;  %v563_v1 = vunpack.c.l.bf16 %v1059_v60 }
 0x364   : > { %v601_v62 = vpop.f32.mrb[4].mxu0 }
 0x365   : > { %v603_v63 = vpop.f32.mrb[5].mxu0  ;;  %v602_v35 = vadd.f32 %v601_v62, %v563_v1 }
 0x366   : > { %v604_v0 = vadd.f32 %v603_v63, %v564_v61  ;;  %v605_v18 = vpop.f32.mrb[6].mxu0 }
 0x367   : > { %v606_v19 = vpop.f32.mrb[7].mxu0  ;;  %v1061_v36 = vmul.f32 -1.442695, %v602_v35 }
 0x368   : > { %v1062_v29 = vmul.f32 -1.442695, %v604_v0 }
 0x36a   : > { %1345 = vpow2.f32 %v1062_v29 }
 0x374   : > { %v1346_v30 = vpop.eup %1345 }
 0x375   : > { %v617_v31 = vadd.f32 1.0, %v1346_v30 }
 0x377   : > { %1347 = vrcp.f32 %v617_v31 }
 0x378   : > { %1349 = vpow2.f32 %v1061_v36 }
 0x381   : > { %v1348_v32 = vpop.eup %1347 }
 0x382   : > { %v620_v33 = vmul.f32 %v1348_v32, %v1976_v58  ;;  %v1350_v38 = vpop.eup %1349  ;;  %v779_v32 = vunpack.c.l.bf16 %v1069_v57 }
 0x383   : > { %v611_v40 = vadd.f32 1.0, %v1350_v38 }
 0x384   : > { %v621_v34 = vpack.c.bf16 %v620_v33, %v620_v33 }
 0x386   : > { %1153 = vmatmul.mubr.bf16.vlgmr.msra.gmra.mrb[4].mxu1 %v621_v34 }
 0x387   : > { %1157 = vmatpush3.bf16.msra.mxu1 %v1915_v20  ;;  %1172 = vmatprep.mubr.msk.bf16.mxu1 %vm1593_vm0, %v1592_v21 }
 0x388   : > { %1158 = vmatprep.subr.bf16.mxu1 %v1592_v21 }
 0x38b   : > { %1159 = vmatpush3.bf16.msra.mxu1 %v1920_v22 }
 0x38c   : > { %1160 = vmatprep.subr.bf16.mxu1 %v1592_v21 }
 0x38f   : > { %1161 = vmatpush3.bf16.msra.mxu1 %v1924_v23 }
 0x390   : > { %1162 = vmatprep.subr.bf16.mxu1 %v1592_v21 }
 0x393   : > { %1163 = vmatpush3.bf16.msra.mxu1 %v1928_v24 }
 0x394   : > { %1164 = vmatprep.subr.bf16.mxu1 %v1592_v21 }
 0x397   : > { %1165 = vmatpush3.bf16.msra.mxu1 %v1932_v25 }
 0x398   : > { %1166 = vmatprep.subr.bf16.mxu1 %v1592_v21 }
 0x39b   : > { %1167 = vmatpush3.bf16.msra.mxu1 %v1935_v26 }
 0x39c   : > { %1168 = vmatprep.subr.bf16.mxu1 %v1592_v21 }
 0x39f   : > { %1169 = vmatpush3.bf16.msra.mxu1 %v1941_v27 }
 0x3a0   : > { %1170 = vmatprep.subr.bf16.mxu1 %v1592_v21 }
 0x3a3   : > { %1171 = vmatpush3.bf16.msra.mxu1 %v1945_v28 }
 0x3a4   : > { %1176 = vmatprep.subr.bf16.mxu1 %v1592_v21 }
 0x459   : > { %v656_v39 = vpop.f32.mrb[4].mxu1 }
 0x45a   : > { %v657_v41 = vadd.f32 %v656_v39, %v565_v37  ;;  %v1154_v42 = vpop.f32.mrb[5].mxu1 }
 0x45b   : > { %v659_v43 = vpop.f32.mrb[6].mxu1 }
 0x45c   : > { %1351 = vtanh.f32 %v657_v41  ;;  %v1155_v44 = vpop.f32.mrb[7].mxu1 }
 0x45d   : > { %1353 = vrcp.f32 %v611_v40 }
 0x466   : > { %v1352_v46 = vpop.eup %1351 }
 0x467   : > { %v663_v47 = vsub.f32 %v1352_v46, %v1976_v58  ;;  %v1354_v48 = vpop.eup %1353 }
 0x469   : > { %v664_v49 = vmul.f32 %v1354_v48, %v663_v47 }
 0x46b   : > { %v2022_v50 = vadd.f32 %v664_v49, %v1976_v58  ;;  %v780_v58 = vunpack.c.h.bf16 %v1069_v57 }
 0x46d   : > { %1063 = vst [vmem:[%s1841_s21 + $0x8] sm:$0xff] %v2022_v50  ;;  %v674_v45 = vpack.c.bf16 %v2022_v50, %v2022_v50 }
 0x46f   : > { %708 = vmatmul.mubr.bf16.vlgmr.msra.gmra.mrb[8].mxu0 %v674_v45 }
 0x470   : > { %784 = vmatpush1.bf16.msra.mxu0 %v1846_v2  ;;  %815 = vmatprep.mubr.bf16.mxu0 %v1591_v3  ;;  %v1064_v2 = vld [vmem:[%s1826_s6 + $0x18] sm:$0xff] }
 0x471   : > { %785 = vmatprep.subr.bf16.mxu0 %v1850_v4  ;;  %v672_v3 = vunpack.c.h.bf16 %v1064_v2 }
 0x474   : > { %786 = vmatpush1.bf16.msra.mxu0 %v1853_v5 }
 0x475   : > { %787 = vmatprep.subr.bf16.mxu0 %v1856_v6 }
 0x478   : > { %788 = vmatpush1.bf16.msra.mxu0 %v1859_v7 }
 0x479   : > { %789 = vmatprep.subr.bf16.mxu0 %v1862_v8 }
 0x47c   : > { %790 = vmatpush1.bf16.msra.mxu0 %v1864_v9 }
 0x47d   : > { %791 = vmatprep.subr.bf16.mxu0 %v1867_v10 }
 0x480   : > { %792 = vmatpush1.bf16.msra.mxu0 %v1870_v11 }
 0x481   : > { %793 = vmatprep.subr.bf16.mxu0 %v1874_v12 }
 0x484   : > { %794 = vmatpush1.bf16.msra.mxu0 %v1877_v13 }
 0x485   : > { %795 = vmatprep.subr.bf16.mxu0 %v1880_v14 }
 0x488   : > { %796 = vmatpush1.bf16.msra.mxu0 %v1883_v15  ;;  %v671_v15 = vunpack.c.l.bf16 %v1064_v2 }
 0x489   : > { %797 = vmatprep.subr.bf16.mxu0 %v1886_v16 }
 0x48c   : > { %798 = vmatpush1.bf16.msra.mxu0 %v1889_v17 }
 0x542   : > { %v709_v4 = vpop.f32.mrb[8].mxu0 }
 0x543   : > { %v711_v5 = vpop.f32.mrb[9].mxu0  ;;  %v710_v16 = vadd.f32 %v709_v4, %v671_v15 }
 0x544   : > { %v712_v6 = vadd.f32 %v711_v5, %v672_v3  ;;  %v713_v7 = vpop.f32.mrb[10].mxu0 }
 0x545   : > { %v714_v8 = vpop.f32.mrb[11].mxu0  ;;  %v1066_v17 = vmul.f32 -1.442695, %v710_v16 }
 0x546   : > { %v1067_v9 = vmul.f32 -1.442695, %v712_v6 }
 0x548   : > { %1355 = vpow2.f32 %v1067_v9 }
 0x552   : > { %v1356_v10 = vpop.eup %1355 }
 0x553   : > { %v725_v11 = vadd.f32 1.0, %v1356_v10 }
 0x555   : > { %1357 = vrcp.f32 %v725_v11 }
 0x556   : > { %1359 = vpow2.f32 %v1066_v17 }
 0x55f   : > { %v1358_v12 = vpop.eup %1357 }
 0x560   : > { %v728_v13 = vmul.f32 %v1358_v12, %v2022_v50 }
 0x562   : > { %v729_v14 = vpack.c.bf16 %v728_v13, %v728_v13 }
 0x564   : > { %1173 = vmatmul.mubr.bf16.vlgmr.msra.gmra.mrb[8].mxu1 %v729_v14 }
 0x565   : > { %1177 = vmatpush3.bf16.msra.mxu1 %v1915_v20  ;;  %1192 = vmatprep.mubr.msk.bf16.mxu1 %vm1593_vm0, %v1592_v21  ;;  %v1065_v20 = vld [vmem:[%s1826_s6 + $0x20] ss:$12 sps:$4 sm:$0xff]  }
 0x566   : > { %1178 = vmatprep.subr.bf16.mxu1 %v1592_v21  ;;  %v781_v1 = vunpack.c.h.bf16 %v1065_v20 }
 0x569   : > { %1179 = vmatpush3.bf16.msra.mxu1 %v1920_v22  ;;  %v673_v22 = vunpack.c.l.bf16 %v1065_v20 }
 0x56a   : > { %1180 = vmatprep.subr.bf16.mxu1 %v1592_v21 }
 0x56d   : > { %1181 = vmatpush3.bf16.msra.mxu1 %v1924_v23  ;;  %v1360_v23 = vpop.eup %1359 }
 0x56e   : > { %1182 = vmatprep.subr.bf16.mxu1 %v1592_v21 }
 0x571   : > { %1183 = vmatpush3.bf16.msra.mxu1 %v1928_v24 }
 0x572   : > { %1184 = vmatprep.subr.bf16.mxu1 %v1592_v21 }
 0x575   : > { %1185 = vmatpush3.bf16.msra.mxu1 %v1932_v25  ;;  %v719_v25 = vadd.f32 1.0, %v1360_v23 }
 0x576   : > { %1186 = vmatprep.subr.bf16.mxu1 %v1592_v21 }
 0x579   : > { %1187 = vmatpush3.bf16.msra.mxu1 %v1935_v26 }
 0x57a   : > { %1188 = vmatprep.subr.bf16.mxu1 %v1592_v21 }
 0x57d   : > { %1189 = vmatpush3.bf16.msra.mxu1 %v1941_v27 }
 0x57e   : > { %1190 = vmatprep.subr.bf16.mxu1 %v1592_v21 }
 0x581   : > { %1191 = vmatpush3.bf16.msra.mxu1 %v1945_v28 }
 0x637   : > { %v764_v24 = vpop.f32.mrb[8].mxu1 }
 0x638   : > { %v765_v26 = vadd.f32 %v764_v24, %v673_v22  ;;  %v1174_v51 = vpop.f32.mrb[9].mxu1 }
 0x639   : > { %v767_v52 = vpop.f32.mrb[10].mxu1 }
 0x63a   : > { %1361 = vtanh.f32 %v765_v26  ;;  %v1175_v27 = vpop.f32.mrb[11].mxu1 }
 0x63b   : > { %1363 = vrcp.f32 %v719_v25 }
 0x644   : > { %v1362_v21 = vpop.eup %1361 }
 0x645   : > { %v771_v28 = vsub.f32 %v1362_v21, %v2022_v50  ;;  %v1364_v53 = vpop.eup %1363 }
 0x647   : > { %v772_v54 = vmul.f32 %v1364_v53, %v771_v28 }
 0x649   : > { %v773_v55 = vadd.f32 %v772_v54, %v2022_v50 }
 0x64b   : > { %1068 = vst [vmem:[%s1841_s21 + $0x10] sm:$0xff] %v773_v55  ;;  %v782_v56 = vpack.c.bf16 %v773_v55, %v773_v55 }
 0x64d   : > { %816 = vmatmul.mubr.bf16.vlgmr.msra.gmra.mrb[12].mxu0 %v782_v56 }
 0x720   : > { %v817_v59 = vpop.f32.mrb[12].mxu0 }
 0x721   : > { %v819_v60 = vpop.f32.mrb[13].mxu0  ;;  %v818_v33 = vadd.f32 %v817_v59, %v779_v32 }
 0x722   : > { %v820_v61 = vadd.f32 %v819_v60, %v780_v58  ;;  %v821_v62 = vpop.f32.mrb[14].mxu0 }
 0x723   : > { %v822_v63 = vpop.f32.mrb[15].mxu0  ;;  %v1071_v34 = vmul.f32 -1.442695, %v818_v33 }
 0x724   : > { %v1072_v0 = vmul.f32 -1.442695, %v820_v61 }
 0x726   : > { %1365 = vpow2.f32 %v1072_v0 }
 0x730   : > { %v1366_v18 = vpop.eup %1365 }
 0x731   : > { %v833_v19 = vadd.f32 1.0, %v1366_v18 }
 0x733   : > { %1367 = vrcp.f32 %v833_v19 }
 0x734   : > { %1369 = vpow2.f32 %v1071_v34 }
 0x73d   : > { %v1368_v29 = vpop.eup %1367 }
 0x73e   : > { %v836_v30 = vmul.f32 %v1368_v29, %v773_v55  ;;  %v1370_v35 = vpop.eup %1369 }
 0x73f   : > { %v827_v37 = vadd.f32 1.0, %v1370_v35 }
 0x740   : > { %v837_v31 = vpack.c.bf16 %v836_v30, %v836_v30 }
 0x742   : > { %1193 = vmatmul.mubr.bf16.vlgmr.msra.gmra.mrb[12].mxu1 %v837_v31 }
 0x815   : > { %v872_v36 = vpop.f32.mrb[12].mxu1 }
 0x816   : > { %v873_v38 = vadd.f32 %v872_v36, %v781_v1  ;;  %v1194_v39 = vpop.f32.mrb[13].mxu1 }
 0x817   : > { %v875_v40 = vpop.f32.mrb[14].mxu1 }
 0x818   : > { %1371 = vtanh.f32 %v873_v38  ;;  %v1195_v41 = vpop.f32.mrb[15].mxu1 }
 0x819   : > { %1373 = vrcp.f32 %v827_v37 }
 0x822   : > { %v1372_v42 = vpop.eup %1371 }
 0x823   : > { %v879_v43 = vsub.f32 %v1372_v42, %v773_v55  ;;  %v1374_v44 = vpop.eup %1373 }
 0x825   : > { %v880_v46 = vmul.f32 %v1374_v44, %v879_v43 }
 0x827   : > { %v881_v47 = vadd.f32 %v880_v46, %v773_v55 }
 0x829   : > { %1073 = vst [vmem:[%s1841_s21 + $0x18] sm:$0xff] %v881_v47  ;;  %884 = vst [vmem:[#allocation2] sm:$0xff] %v881_v47 }
 0x82a   : > { %1502 = shalt.err (!%p1499_p10)
}
 0x82b   : > { %s1503_s12 = scalar_lea.hbm %s2073_s28, 512  ;;  %s1507_s6 = scalar_lea.hbm %s2129_s4, 1024 }
 0x82c   : > { %p1504_p13 = scmp.ne.s32.totalorder %s2073_s28, %s1503_s12  ;;  %p1508_p7 = scmp.lt.u32.totalorder %s2073_s28, %s2129_s4 }
 0x82d   : > { %p1509_p11 = scmp.lt.u32.totalorder %s1507_s6, %s1503_s12  ;;  %p1511_p1 = scmp.lt.u32.totalorder %s1503_s12, %s2073_s28 }
 0x82e   : > { %p1505_p9 = pnand %p1504_p13, %p1766_p2 }
 0x82f   : > { %p1510_p12 = por %p1509_p11, %p1508_p7 }
 0x830   : > { %p1506_p3 = pneg %p1505_p9 }
 0x831   : > { %p1512_p4 = por %p1511_p1, %p1510_p12 }
 0x833   : > { %p1513_p6 = pnand %p1512_p4, %p1506_p3 }
 0x835   : > { %1516 = shalt.err (!%p1513_p6)
}
 0x836   : > { %s1595_s23 = smov 128   ;;  %s1596_s7 = smov 8  }
 0x837   : > { %1213 = dma.vmem_to_hbm [thread:$0]  (%p1766_p2), %s2075_s25, 512, %s2073_s28, %s886_s8, %s1595_s23, %s1595_s23, %s1596_s7  }
 0x838 PF: > { %s915_s14 = sand.u32 1, %s1559_s15   ;;  %p2147_p8 = scmp.ne.s32.totalorder %s2137_s26, 0 }
 0x839   : > { %p2148_p0 = scmp.ge.s32.totalorder %s1579_s20, 2  ;;  %s916_s5 = scalar_lea.sflag [#allocation5], %s915_s14 }
 0x83b   : > { %p1230_p5 = pnand %p2148_p0, %p2147_p8 }
 0x83d   : > { %1554 = dma.done.wait (!%p1230_p5), %s916_s5, 512  }
 0x83e   : > { %1556 = vsyncadd (!%p1230_p5), %s916_s5, 4294966784  ;;  %s22_s20 = sadd.s32 1, %s1579_s20   ;;  %s2149_s15 = smov %s1563_s16 }
 0x83f   : > { %p19_p10 = scmp.ge.s32.totalorder %s22_s20, 4   ;;  %s2150_s16 = smov %s1567_s17 }
 0x840   : > { %s2151_s17 = smov %s1782_s24  ;;  %s2152_s18 = smov %s1575_s19 }
 0x841   : > { %s2153_s19 = smov %s2155_s10  ;;  %21 = sbr.rel (!%p19_p10) target bundleno = 8 (0x8), region = 104 }
 0x848   :  { %921 = vsyncpa [#allocation4], 1 }
 0x849   :  { %923 = vsyncpa [#allocation4 + $0x1], 1 }
 0x84a   :  { %924 = vsyncpa [#allocation7], 1 }
 0x84b   :  { %925 = vsyncpa [#allocation10], 1 }
 0x84c   :  { %926 = vsyncpa [#allocation5], 1 }
 0x84d   :  { %928 = vsyncpa [#allocation5 + $0x1], 1 }

// kernel: tpu_custom_call.1
= control target key start
LH: loop header
LB: loop body
LE: loop exit
PB: predicated region body
PF: predicated region fallthrough
CT: control target
= control target key end

     0   :  { %9 = vsyncpa [#allocation4], 0  ;;  %s2125_s0 = inlined_call_operand.hbm [shape: bf16[8,8,384], index: 0, kind: input, shape index: {}]   ;;  %s2126_s1 = inlined_call_operand.hbm [shape: f32[8,128], index: 1, kind: input, shape index: {}]   ;;  %s2127_s2 = inlined_call_operand.hbm [shape: bf16[128,256], index: 2, kind: input, shape index: {}]   ;;  %s2128_s3 = inlined_call_operand.hbm [shape: bf16[128,128], index: 3, kind: input, shape index: {}]   ;;  %s2129_s4 = inlined_call_operand.hbm [shape: f32[8,8,128], index: 4, kind: output, shape index: {}]  }
   0x1   :  { %11 = vsyncpa [#allocation4 + $0x1], 0 }
   0x2   :  { %12 = vsyncpa [#allocation7], 0 }
   0x3   :  { %13 = vsyncpa [#allocation10], 0 }
   0x4   :  { %14 = vsyncpa [#allocation5], 0 }
   0x5   :  { %16 = vsyncpa [#allocation5 + $0x1], 0  ;;  %s1622_s15 = smov 0   ;;  %s1624_s16 = smov 0  }
   0x6   :  { %s1626_s17 = smov 0   ;;  %s1628_s18 = smov 0  }
   0x7   :  { %s1630_s19 = smov 0   ;;  %s1632_s20 = smov 0  }
   0x8 LB: > { %s1017_s21 = sadd.s32 4294967295, %s1579_s20   ;;  %s1018_s22 = sadd.s32 4294967294, %s1579_s20   ;;  %s1579_s20 = sphi %s1632_s20, %s22_s20   ;;  %s1575_s19 = sphi %s1630_s19, %s2153_s19   ;;  %s1571_s18 = sphi %s1628_s18, %s2152_s18   ;;  %s1567_s17 = sphi %s1626_s17, %s2151_s17   ;;  %s1563_s16 = sphi %s1624_s16, %s2150_s16   ;;  %s1559_s15 = sphi %s1622_s15, %s2149_s15  }
   0x9   : > { %p56_p0 = scmp.ne.s32.totalorder %s1563_s16, %s1559_s15  ;;  %p1656_p1 = scmp.eq.s32.totalorder %s1017_s21, 0 }
   0xa   : > { %p1660_p2 = scmp.eq.s32.totalorder %s1017_s21, 1  ;;  %p156_p3 = scmp.eq.s32.totalorder %s1018_s22, 1 }
   0xb   : > { %s2134_s23 = scalar_select %p1656_p1, 1, 0 }
   0xc   : > { %s2135_s24 = scalar_select %p1660_p2, 1, 0 }
   0xd   : > { %p1666_p4 = por %p1656_p1, %p56_p0  ;;  %p1019_p5 = scmp.ge.s32.totalorder %s1579_s20, 1 }
   0xe   : > { %p1671_p6 = por %p156_p3, %p56_p0  ;;  %p163_p7 = scmp.lt.s32.totalorder %s1579_s20, 3 }
   0xf   : > { %s2136_s25 = scalar_select %p1666_p4, 1, 0 }
  0x10   : > { %s2137_s26 = scalar_select %p1671_p6, 1, 0 }
  0x11   : > { %p1676_p8 = pnand %p1019_p5, %p163_p7  ;;  %s1581_s28 = smov [#allocation6]  }
  0x12   : > { %s178_s29 = sshll.u32 %s1581_s28, 4  ;;  %s1582_s30 = smov [#allocation8]   ;;  %s179_s29 = int_to_ptr.vmem [resolvable:$true] %s178_s29 }
  0x13   : > { %s2138_s27 = scalar_select %p1676_p8, 1, 0 }
  0x14   : > { %p1215_p10 = pneg %p1676_p8  ;;  %s188_s5 = sshll.u32 %s1582_s30, 4  ;;  %s1689_s5 = int_to_ptr.vmem [resolvable:$true] %s188_s5 }
  0x15   : > { %s1583_s7 = smov [#allocation9]   ;;  %s1375_s11 = scalar_lea.hbm %s2126_s1, 128 }
  0x16   : > { %p1685_p11 = pnand %p1215_p10, %p1656_p1  ;;  %s1691_s8 = sshll.u32 %s1583_s7, 4  ;;  %s202_s8 = int_to_ptr.vmem [resolvable:$true] %s1691_s8 }
  0x17   : > { %p1376_p12 = scmp.ne.s32.totalorder %s2126_s1, %s1375_s11  ;;  %p1382_p5 = scmp.lt.u32.totalorder %s1375_s11, %s2126_s1 }
  0x18   : > { %p1701_p13 = pneg %p1685_p11 }
  0x1a   : > { %p1378_p0 = pnand %p1701_p13, %p1376_p12 }
  0x1c   : > { %p1379_p3 = pneg %p1378_p0 }
  0x1e   : > { %p1384_p7 = pnand %p1382_p5, %p1379_p3 }
  0x20   : > { %1387 = shalt.err (!%p1384_p7)
}
  0x21   : > { %s1388_s28 = scalar_lea.vmem %s179_s29, 128  ;;  %p1396_p1 = scmp.lt.s32.totalorder %s179_s29, %s179_s29 }
  0x22   : > { %p1389_p10 = scmp.ne.s32.totalorder %s179_s29, %s1388_s28  ;;  %p1397_p4 = scmp.lt.s32.totalorder %s1388_s28, %s1388_s28 }
  0x24   : > { %p1391_p9 = pnand %p1389_p10, %p1701_p13  ;;  %p1398_p8 = por %p1397_p4, %p1396_p1 }
  0x26   : > { %p1392_p6 = pneg %p1391_p9 }
  0x28   : > { %p1399_p2 = pnand %p1398_p8, %p1392_p6 }
  0x2a   : > { %1402 = shalt.err (!%p1399_p2)
}
  0x2b   : > { %1218 = dma.hbm_to_vmem [thread:$0]  (!%p1685_p11), %s2126_s1, 128, %s179_s29, [#allocation7]  }
  0x2c   : > { %s1403_s11 = scalar_lea.hbm %s2127_s2, 2048 }
  0x2d   : > { %p1404_p9 = scmp.ne.s32.totalorder %s2127_s2, %s1403_s11  ;;  %p1410_p2 = scmp.lt.u32.totalorder %s1403_s11, %s2127_s2 }
  0x2f   : > { %p1406_p12 = pnand %p1404_p9, %p1701_p13 }
  0x31   : > { %p1407_p1 = pneg %p1406_p12 }
  0x33   : > { %p1412_p4 = pnand %p1410_p2, %p1407_p1 }
  0x35   : > { %1415 = shalt.err (!%p1412_p4)
}
  0x36   : > { %s1416_s29 = scalar_lea.vmem %s1689_s5, 2048  ;;  %p1424_p3 = scmp.lt.s32.totalorder %s1689_s5, %s1689_s5 }
  0x37   : > { %p1417_p6 = scmp.ne.s32.totalorder %s1689_s5, %s1416_s29  ;;  %p1425_p5 = scmp.lt.s32.totalorder %s1416_s29, %s1416_s29 }
  0x39   : > { %p1419_p8 = pnand %p1417_p6, %p1701_p13  ;;  %p1426_p7 = por %p1425_p5, %p1424_p3 }
  0x3b   : > { %p1420_p0 = pneg %p1419_p8 }
  0x3d   : > { %p1427_p10 = pnand %p1426_p7, %p1420_p0 }
  0x3f   : > { %1430 = shalt.err (!%p1427_p10)
}
  0x40   : > { %s1584_s28 = smov 128   ;;  %s1585_s30 = smov 8  }
  0x41   : > { %1221 = dma.hbm_to_vmem [thread:$0]  (!%p1685_p11), %s2127_s2, 2048, %s1689_s5, [#allocation7], %s1584_s28, %s1584_s28, %s1585_s30  }
  0x42   : > { %s1431_s12 = scalar_lea.hbm %s2128_s3, 1024 }
  0x43   : > { %p1432_p9 = scmp.ne.s32.totalorder %s2128_s3, %s1431_s12  ;;  %p1438_p2 = scmp.lt.u32.totalorder %s1431_s12, %s2128_s3 }
  0x45   : > { %p1434_p12 = pnand %p1432_p9, %p1701_p13 }
  0x47   : > { %p1435_p1 = pneg %p1434_p12 }
  0x49   : > { %p1440_p4 = pnand %p1438_p2, %p1435_p1 }
  0x4b   : > { %1443 = shalt.err (!%p1440_p4)
}
  0x4c   : > { %s1444_s7 = scalar_lea.vmem %s202_s8, 1024  ;;  %p1452_p3 = scmp.lt.s32.totalorder %s202_s8, %s202_s8 }
  0x4d   : > { %p1445_p6 = scmp.ne.s32.totalorder %s202_s8, %s1444_s7  ;;  %p1453_p5 = scmp.lt.s32.totalorder %s1444_s7, %s1444_s7 }
  0x4f   : > { %p1447_p8 = pnand %p1445_p6, %p1701_p13  ;;  %p1454_p7 = por %p1453_p5, %p1452_p3 }
  0x51   : > { %p1448_p0 = pneg %p1447_p8 }
  0x53   : > { %p1455_p10 = pnand %p1454_p7, %p1448_p0 }
  0x55   : > { %1458 = shalt.err (!%p1455_p10)
}
  0x56   : > { %s1586_s5 = smov 64   ;;  %s1587_s14 = smov 4  }
  0x57   : > { %1224 = dma.hbm_to_vmem [thread:$0]  (!%p1685_p11), %s2128_s3, 1024, %s202_s8, [#allocation10], %s1586_s5, %s1586_s5, %s1587_s14  }
  0x58   : > { %s43_s9 = sadd.s32 1, %s1567_s17  ;;  %s31_s10 = sadd.s32 1, %s1575_s19 }
  0x59   : > { %p50_p13 = scmp.ne.s32.totalorder %s1567_s17, %s1563_s16  ;;  %p32_p9 = scmp.ge.s32.totalorder %s31_s10, 2 }
  0x5a   : > { %p51_p12 = scmp.eq.s32.totalorder %s1579_s20, 0  ;;  %p2141_p1 = scmp.ne.s32.totalorder %s2135_s24, 0 }
  0x5b   : > { %p1236_p4 = scmp.lt.s32.totalorder %s1579_s20, 2  ;;  %s2155_s10 = smov (%p32_p9, %s31_s10), 0 }
  0x5c   : > { %p1766_p2 = por %p2141_p1, %p50_p13  ;;  %p52_p6 = por %p51_p12, %p50_p13 }
  0x5d   : > { %s215_s6 = sand.u32 1, %s1567_s17   ;;  %s38_s12 = ssub.s32 %s1575_s19, %s2155_s10 }
  0x5e   : > { %p41_p8 = scmp.eq.s32.totalorder %s38_s12, 0  ;;  %s1196_s8 = smul.u32 48, %s215_s6 }
  0x5f   : > { %s1197_s13 = smul.u32 768, %s1575_s19  ;;  %p1777_p11 = pnand %p1236_p4, %p52_p6 }
  0x60   : > { %s1782_s24 = scalar_select %p41_p8, %s1567_s17, %s43_s9  }
  0x61   : > { %s1787_s7 = scalar_lea.hbm %s2125_s0, %s1197_s13  ;;  %s219_s5 = scalar_lea.vmem [#allocation3], %s1196_s8 }
  0x62   : > { %s229_s14 = sshll.u32 %s219_s5, 4  ;;  %s1791_s28 = scalar_lea.sflag [#allocation4], %s215_s6  ;;  %s1789_s14 = int_to_ptr.vmem [resolvable:$true] %s229_s14 }
  0x63   : > { %s1459_s30 = scalar_lea.hbm %s1787_s7, 768  ;;  %p1461_p3 = pneg %p1777_p11 }
  0x64   : > { %p1460_p0 = scmp.ne.s32.totalorder %s1787_s7, %s1459_s30  ;;  %s1464_s13 = scalar_lea.hbm %s2125_s0, 1536 }
  0x65   : > { %p1465_p10 = scmp.lt.u32.totalorder %s1787_s7, %s2125_s0  ;;  %p1466_p13 = scmp.lt.u32.totalorder %s1464_s13, %s1459_s30 }
  0x66   : > { %p1462_p5 = pnand %p1461_p3, %p1460_p0  ;;  %p1468_p12 = scmp.lt.u32.totalorder %s1459_s30, %s1787_s7 }
  0x67   : > { %p1467_p9 = por %p1466_p13, %p1465_p10 }
  0x68   : > { %p1463_p7 = pneg %p1462_p5 }
  0x69   : > { %p1469_p1 = por %p1468_p12, %p1467_p9 }
  0x6b   : > { %p1470_p4 = pnand %p1469_p1, %p1463_p7 }
  0x6d   : > { %1473 = shalt.err (!%p1470_p4)
}
  0x6e   : > { %s1474_s6 = scalar_lea.vmem %s1789_s14, 768  ;;  %s1588_s8 = smov [#allocation3]  }
  0x6f   : > { %p1475_p6 = scmp.ne.s32.totalorder %s1789_s14, %s1474_s6  ;;  %s1479_s5 = sshll.u32 %s1588_s8, 4  ;;  %s1480_s5 = int_to_ptr.vmem [resolvable:$false] %s1479_s5 }
  0x70   : > { %s1481_s9 = scalar_lea.vmem %s1480_s5, 1536  ;;  %p1482_p5 = scmp.lt.s32.totalorder %s1789_s14, %s1480_s5 }
  0x71   : > { %p1477_p8 = pnand %p1475_p6, %p1461_p3  ;;  %p1483_p10 = scmp.lt.s32.totalorder %s1481_s9, %s1474_s6 }
  0x73   : > { %p1478_p0 = pneg %p1477_p8  ;;  %p1484_p13 = por %p1483_p10, %p1482_p5 }
  0x75   : > { %p1485_p9 = pnand %p1484_p13, %p1478_p0 }
  0x77   : > { %1488 = shalt.err (!%p1485_p9)
}
  0x78   : > { %s1589_s30 = smov 192   ;;  %s1590_s12 = smov 12  }
  0x79   : > { %1228 = dma.hbm_to_vmem [thread:$0]  (!%p1777_p11), %s1787_s7, 768, %s1789_s14, %s1791_s28, %s1589_s30, %s1589_s30, %s1590_s12  }
  0x7a   : > { %p2144_p3 = scmp.ne.s32.totalorder %s2138_s27, 0 }
  0x7b   : > { %s1822_s13 = sand.u32 (!%p2144_p3), 1, %s1563_s16   ;;  %p2145_p7 = scmp.ne.s32.totalorder (!%p2144_p3), %s2136_s25, 0 }
  0x7c   : > { %241 = sbr.rel (%p2144_p3) target bundleno = 2104 (0x838), region = 36  ;;  %s244_s29 = scalar_lea.sflag (!%p2144_p3), [#allocation4], %s1822_s13 }
  0x7d   : > { %s1198_s22 = smul.u32 (!%p2144_p3), 48, %s1822_s13 }
  0x7f   : > { %s1826_s6 = scalar_lea.vmem (!%p2144_p3), [#allocation3], %s1198_s22 }
  0x83   : > { %1542 = dma.done.wait (%p2145_p7), %s244_s29, 768  }
  0x84   : > { %1544 = vsyncadd (%p2145_p7), %s244_s29, 4294966528  ;;  %p2146_p11 = scmp.ne.s32.totalorder %s2134_s23, 0 }
  0x86   : > { %1546 = dma.done.wait (%p2146_p11), [#allocation7], 2176  }
  0x87   : > { %1548 = vsyncadd (%p2146_p11), [#allocation7], 4294965120 }
  0x88   : > { %1550 = dma.done.wait (%p2146_p11), [#allocation10], 1024  }
  0x89   : > { %1552 = vsyncadd (%p2146_p11), [#allocation10], 4294966272  ;;  %s1031_s27 = sshll.u32 %s1822_s13, 5  ;;  %p1032_p12 = scmp.ne.s32.totalorder %s1571_s18, 0 }
  0x8a   : > { %s1841_s21 = scalar_lea.vmem [#allocation11], %s1031_s27  ;;  %v291_v0 = vld [vmem:[#allocation6] sm:$0xff] (!%p1032_p12) }
  0x8b   : > { %290 = sbr.rel (%p1032_p12) target bundleno = 146 (0x92), region = 56  ;;  %292 = vst [vmem:[#allocation2] sm:$0xff] (!%p1032_p12), %v291_v0 }
  0x92 PF: > { %v1844_v1 = vld [vmem:[#allocation8 + $0x4] ss:$8 sps:$4 sm:$0xff]   ;;  %v1846_v2 = vld [vmem:[#allocation8] ss:$8 sps:$4 sm:$0xff]   ;;  %v1591_v3 = vmov 0   ;;  %v1891_v18 = vld [vmem:[#allocation2] sm:$0xff] }
  0x93   : > { %444 = vmatprep.mubr.bf16.mxu0 %v1591_v3  ;;  %412 = vmatprep.subr.bf16.mxu0 %v1844_v1  ;;  %v1850_v4 = vld [vmem:[#allocation8 + $0x14] ss:$8 sps:$4 sm:$0xff]   ;;  %v1853_v5 = vld [vmem:[#allocation8 + $0x10] ss:$8 sps:$4 sm:$0xff]   ;;  %v1856_v6 = vld [vmem:[#allocation8 + $0x24] ss:$8 sps:$4 sm:$0xff]   ;;  %v331_v19 = vpack.c.bf16 %v1891_v18, %v1891_v18 }
  0x94   : > { %413 = vmatpush1.bf16.msra.mxu0 %v1846_v2  ;;  %v1859_v7 = vld [vmem:[#allocation8 + $0x20] ss:$8 sps:$4 sm:$0xff]   ;;  %v1862_v8 = vld [vmem:[#allocation8 + $0x34] ss:$8 sps:$4 sm:$0xff]   ;;  %v1864_v9 = vld [vmem:[#allocation8 + $0x30] ss:$8 sps:$4 sm:$0xff]  }
  0x95   : > { %414 = vmatprep.subr.bf16.mxu0 %v1850_v4  ;;  %v1867_v10 = vld [vmem:[#allocation8 + $0x44] ss:$8 sps:$4 sm:$0xff]   ;;  %v1870_v11 = vld [vmem:[#allocation8 + $0x40] ss:$8 sps:$4 sm:$0xff]   ;;  %v1874_v12 = vld [vmem:[#allocation8 + $0x54] ss:$8 sps:$4 sm:$0xff]  }
  0x96   : > { %v1877_v13 = vld [vmem:[#allocation8 + $0x50] ss:$8 sps:$4 sm:$0xff]   ;;  %v1880_v14 = vld [vmem:[#allocation8 + $0x64] ss:$8 sps:$4 sm:$0xff]   ;;  %v1883_v15 = vld [vmem:[#allocation8 + $0x60] ss:$8 sps:$4 sm:$0xff]  }
  0x97   : > { %v1886_v16 = vld [vmem:[#allocation8 + $0x74] ss:$8 sps:$4 sm:$0xff]   ;;  %v1889_v17 = vld [vmem:[#allocation8 + $0x70] ss:$8 sps:$4 sm:$0xff]   ;;  %v1915_v20 = vld [vmem:[#allocation9] sm:$0xff]   ;;  %v1592_v21 = vmov 0.0  }
  0x98   : > { %415 = vmatpush1.bf16.msra.mxu0 %v1853_v5  ;;  %1116 = vmatprep.subr.bf16.mxu1 %v1592_v21  ;;  %v1920_v22 = vld [vmem:[#allocation9 + $0x8] sm:$0xff]   ;;  %v1924_v23 = vld [vmem:[#allocation9 + $0x10] sm:$0xff]   ;;  %v1928_v24 = vld [vmem:[#allocation9 + $0x18] sm:$0xff]   ;;  %vm1593_vm0 = vmmov 0   ;;  %s1079_s23 = sshll.u32 %s1571_s18, 9  ;;  %s900_s25 = sshll.u32 %s1841_s21, 4  ;;  %s2075_s25 = int_to_ptr.vmem [resolvable:$true] %s900_s25 }
  0x99   : > { %416 = vmatprep.subr.bf16.mxu0 %v1856_v6  ;;  %1117 = vmatpush3.bf16.msra.mxu1 %v1915_v20  ;;  %v1932_v25 = vld [vmem:[#allocation9 + $0x20] sm:$0xff]   ;;  %v1935_v26 = vld [vmem:[#allocation9 + $0x28] sm:$0xff]   ;;  %v1941_v27 = vld [vmem:[#allocation9 + $0x30] sm:$0xff]   ;;  %s2073_s28 = scalar_lea.hbm %s2129_s4, %s1079_s23  ;;  %s886_s8 = scalar_lea.sflag [#allocation5], %s1822_s13 }
  0x9a   : > { %1118 = vmatprep.subr.bf16.mxu1 %v1592_v21  ;;  %1132 = vmatprep.mubr.msk.bf16.mxu1 %vm1593_vm0, %v1592_v21  ;;  %v1945_v28 = vld [vmem:[#allocation9 + $0x38] sm:$0xff]   ;;  %s1489_s5 = scalar_lea.vmem %s2075_s25, 512  ;;  %s1594_s18 = smov [#allocation11]  }
  0x9b   : > { %v326_v29 = vld [vmem:[%s1826_s6] sm:$0xff]  ;;  %v1971_v45 = vld [vmem:[%s1826_s6 + $0x8] ss:$12 sps:$4 sm:$0xff]   ;;  %v1059_v60 = vld [vmem:[%s1826_s6 + $0xc] sm:$0xff]  ;;  %p1490_p1 = scmp.ne.s32.totalorder %s2075_s25, %s1489_s5  ;;  %s1493_s9 = sshll.u32 %s1594_s18, 4  ;;  %s1494_s9 = int_to_ptr.vmem [resolvable:$false] %s1493_s9 }
  0x9c   : > { %417 = vmatpush1.bf16.msra.mxu0 %v1859_v7  ;;  %v329_v30 = vunpack.c.h.bf16 %v326_v29  ;;  %v328_v42 = vunpack.c.l.bf16 %v326_v29  ;;  %v330_v46 = vunpack.c.l.bf16 %v1971_v45  ;;  %v564_v61 = vunpack.c.h.bf16 %v1059_v60  ;;  %s1495_s30 = scalar_lea.vmem %s1494_s9, 1024  ;;  %p1496_p8 = scmp.lt.s32.totalorder %s2075_s25, %s1494_s9 }
  0x9d   : > { %418 = vmatprep.subr.bf16.mxu0 %v1862_v8  ;;  %1119 = vmatpush3.bf16.msra.mxu1 %v1920_v22  ;;  %p1491_p4 = pnand %p1490_p1, %p1766_p2  ;;  %p1497_p0 = scmp.lt.s32.totalorder %s1495_s30, %s1489_s5 }
  0x9e   : > { %1120 = vmatprep.subr.bf16.mxu1 %v1592_v21 }
  0x9f   : > { %p1492_p6 = pneg %p1491_p4  ;;  %p1498_p5 = por %p1497_p0, %p1496_p8 }
  0xa0   : > { %419 = vmatpush1.bf16.msra.mxu0 %v1864_v9 }
  0xa1   : > { %420 = vmatprep.subr.bf16.mxu0 %v1867_v10  ;;  %1121 = vmatpush3.bf16.msra.mxu1 %v1924_v23  ;;  %p1499_p10 = pnand %p1498_p5, %p1492_p6 }
  0xa2   : > { %1122 = vmatprep.subr.bf16.mxu1 %v1592_v21 }
  0xa4   : > { %421 = vmatpush1.bf16.msra.mxu0 %v1870_v11 }
  0xa5   : > { %422 = vmatprep.subr.bf16.mxu0 %v1874_v12  ;;  %1123 = vmatpush3.bf16.msra.mxu1 %v1928_v24 }
  0xa6   : > { %1124 = vmatprep.subr.bf16.mxu1 %v1592_v21 }
  0xa8   : > { %423 = vmatpush1.bf16.msra.mxu0 %v1877_v13 }
  0xa9   : > { %424 = vmatprep.subr.bf16.mxu0 %v1880_v14  ;;  %1125 = vmatpush3.bf16.msra.mxu1 %v1932_v25 }
  0xaa   : > { %1126 = vmatprep.subr.bf16.mxu1 %v1592_v21 }
  0xac   : > { %425 = vmatpush1.bf16.msra.mxu0 %v1883_v15 }
  0xad   : > { %426 = vmatprep.subr.bf16.mxu0 %v1886_v16  ;;  %1127 = vmatpush3.bf16.msra.mxu1 %v1935_v26 }
  0xae   : > { %1128 = vmatprep.subr.bf16.mxu1 %v1592_v21 }
  0xb0   : > { %427 = vmatpush1.bf16.msra.mxu0 %v1889_v17 }
  0xb1   : > { %567 = vmatprep.subr.bf16.mxu0 %v1844_v1  ;;  %1129 = vmatpush3.bf16.msra.mxu1 %v1941_v27 }
  0xb2   : > { %1130 = vmatprep.subr.bf16.mxu1 %v1592_v21 }
  0xb3   : > { %445 = vmatmul.mubr.bf16.vlgmr.msra.gmra.mrb[0].mxu0 %v331_v19 }
  0xb4   : > { %568 = vmatpush1.bf16.msra.mxu0 %v1846_v2  ;;  %599 = vmatprep.mubr.bf16.mxu0 %v1591_v3 }
  0xb5   : > { %569 = vmatprep.subr.bf16.mxu0 %v1850_v4  ;;  %1131 = vmatpush3.bf16.msra.mxu1 %v1945_v28 }
  0xb6   : > { %1136 = vmatprep.subr.bf16.mxu1 %v1592_v21 }
  0xb8   : > { %570 = vmatpush1.bf16.msra.mxu0 %v1853_v5 }
  0xb9   : > { %571 = vmatprep.subr.bf16.mxu0 %v1856_v6 }
  0xbc   : > { %572 = vmatpush1.bf16.msra.mxu0 %v1859_v7 }
  0xbd   : > { %573 = vmatprep.subr.bf16.mxu0 %v1862_v8 }
  0xc0   : > { %574 = vmatpush1.bf16.msra.mxu0 %v1864_v9 }
  0xc1   : > { %575 = vmatprep.subr.bf16.mxu0 %v1867_v10 }
  0xc4   : > { %576 = vmatpush1.bf16.msra.mxu0 %v1870_v11 }
  0xc5   : > { %577 = vmatprep.subr.bf16.mxu0 %v1874_v12 }
  0xc8   : > { %578 = vmatpush1.bf16.msra.mxu0 %v1877_v13 }
  0xc9   : > { %579 = vmatprep.subr.bf16.mxu0 %v1880_v14 }
  0xcc   : > { %580 = vmatpush1.bf16.msra.mxu0 %v1883_v15 }
  0xcd   : > { %581 = vmatprep.subr.bf16.mxu0 %v1886_v16 }
  0xd0   : > { %582 = vmatpush1.bf16.msra.mxu0 %v1889_v17 }
  0xd1   : > { %675 = vmatprep.subr.bf16.mxu0 %v1844_v1 }
 0x186   : > { %v446_v31 = vpop.f32.mrb[0].mxu0 }
 0x187   : > { %v448_v32 = vpop.f32.mrb[1].mxu0  ;;  %v447_v43 = vadd.f32 %v446_v31, %v328_v42 }
 0x188   : > { %v449_v33 = vadd.f32 %v448_v32, %v329_v30  ;;  %v450_v34 = vpop.f32.mrb[2].mxu0 }
 0x189   : > { %v451_v35 = vpop.f32.mrb[3].mxu0  ;;  %v1049_v44 = vmul.f32 -1.442695, %v447_v43 }
 0x18a   : > { %v1050_v36 = vmul.f32 -1.442695, %v449_v33 }
 0x18c   : > { %1335 = vpow2.f32 %v1050_v36 }
 0x196   : > { %v1336_v37 = vpop.eup %1335 }
 0x197   : > { %v462_v38 = vadd.f32 1.0, %v1336_v37  ;;  %v565_v37 = vunpack.c.h.bf16 %v1971_v45 }
 0x199   : > { %1337 = vrcp.f32 %v462_v38 }
 0x19a   : > { %1339 = vpow2.f32 %v1049_v44 }
 0x1a3   : > { %v1338_v39 = vpop.eup %1337 }
 0x1a4   : > { %v465_v40 = vmul.f32 %v1338_v39, %v1891_v18  ;;  %v1340_v47 = vpop.eup %1339 }
 0x1a5   : > { %v456_v49 = vadd.f32 1.0, %v1340_v47 }
 0x1a6   : > { %v466_v41 = vpack.c.bf16 %v465_v40, %v465_v40 }
 0x1a8   : > { %1133 = vmatmul.mubr.bf16.vlgmr.msra.gmra.mrb[0].mxu1 %v466_v41 }
 0x1a9   : > { %1137 = vmatpush3.bf16.msra.mxu1 %v1915_v20  ;;  %1152 = vmatprep.mubr.msk.bf16.mxu1 %vm1593_vm0, %v1592_v21 }
 0x1aa   : > { %1138 = vmatprep.subr.bf16.mxu1 %v1592_v21 }
 0x1ad   : > { %1139 = vmatpush3.bf16.msra.mxu1 %v1920_v22 }
 0x1ae   : > { %1140 = vmatprep.subr.bf16.mxu1 %v1592_v21 }
 0x1b1   : > { %1141 = vmatpush3.bf16.msra.mxu1 %v1924_v23 }
 0x1b2   : > { %1142 = vmatprep.subr.bf16.mxu1 %v1592_v21 }
 0x1b5   : > { %1143 = vmatpush3.bf16.msra.mxu1 %v1928_v24 }
 0x1b6   : > { %1144 = vmatprep.subr.bf16.mxu1 %v1592_v21 }
 0x1b9   : > { %1145 = vmatpush3.bf16.msra.mxu1 %v1932_v25 }
 0x1ba   : > { %1146 = vmatprep.subr.bf16.mxu1 %v1592_v21 }
 0x1bd   : > { %1147 = vmatpush3.bf16.msra.mxu1 %v1935_v26 }
 0x1be   : > { %1148 = vmatprep.subr.bf16.mxu1 %v1592_v21 }
 0x1c1   : > { %1149 = vmatpush3.bf16.msra.mxu1 %v1941_v27 }
 0x1c2   : > { %1150 = vmatprep.subr.bf16.mxu1 %v1592_v21 }
 0x1c5   : > { %1151 = vmatpush3.bf16.msra.mxu1 %v1945_v28 }
 0x1c6   : > { %1156 = vmatprep.subr.bf16.mxu1 %v1592_v21 }
 0x27b   : > { %v549_v48 = vpop.f32.mrb[0].mxu1 }
 0x27c   : > { %v550_v50 = vadd.f32 %v549_v48, %v330_v46  ;;  %v1134_v51 = vpop.f32.mrb[1].mxu1 }
 0x27d   : > { %v552_v52 = vpop.f32.mrb[2].mxu1 }
 0x27e   : > { %1341 = vtanh.f32 %v550_v50  ;;  %v1135_v53 = vpop.f32.mrb[3].mxu1 }
 0x27f   : > { %1343 = vrcp.f32 %v456_v49 }
 0x288   : > { %v1342_v54 = vpop.eup %1341 }
 0x289   : > { %v556_v55 = vsub.f32 %v1342_v54, %v1891_v18  ;;  %v1344_v56 = vpop.eup %1343 }
 0x28b   : > { %v557_v57 = vmul.f32 %v1344_v56, %v556_v55 }
 0x28d   : > { %v1976_v58 = vadd.f32 %v557_v57, %v1891_v18  ;;  %v1069_v57 = vld [vmem:[%s1826_s6 + $0x24] sm:$0xff] }
 0x28f   : > { %559 = vst [vmem:[%s1841_s21] sm:$0xff] %v1976_v58  ;;  %v566_v59 = vpack.c.bf16 %v1976_v58, %v1976_v58 }
 0x291   : > { %600 = vmatmul.mubr.bf16.vlgmr.msra.gmra.mrb[4].mxu0 %v566_v59 }
 0x292   : > { %676 = vmatpush1.bf16.msra.mxu0 %v1846_v2  ;;  %707 = vmatprep.mubr.bf16.mxu0 %v1591_v3 }
 0x293   : > { %677 = vmatprep.subr.bf16.mxu0 %v1850_v4 }
 0x296   : > { %678 = vmatpush1.bf16.msra.mxu0 %v1853_v5 }
 0x297   : > { %679 = vmatprep.subr.bf16.mxu0 %v1856_v6 }
 0x29a   : > { %680 = vmatpush1.bf16.msra.mxu0 %v1859_v7 }
 0x29b   : > { %681 = vmatprep.subr.bf16.mxu0 %v1862_v8 }
 0x29e   : > { %682 = vmatpush1.bf16.msra.mxu0 %v1864_v9 }
 0x29f   : > { %683 = vmatprep.subr.bf16.mxu0 %v1867_v10 }
 0x2a2   : > { %684 = vmatpush1.bf16.msra.mxu0 %v1870_v11 }
 0x2a3   : > { %685 = vmatprep.subr.bf16.mxu0 %v1874_v12 }
 0x2a6   : > { %686 = vmatpush1.bf16.msra.mxu0 %v1877_v13 }
 0x2a7   : > { %687 = vmatprep.subr.bf16.mxu0 %v1880_v14 }
 0x2aa   : > { %688 = vmatpush1.bf16.msra.mxu0 %v1883_v15 }
 0x2ab   : > { %689 = vmatprep.subr.bf16.mxu0 %v1886_v16 }
 0x2ae   : > { %690 = vmatpush1.bf16.msra.mxu0 %v1889_v17 }
 0x2af   : > { %783 = vmatprep.subr.bf16.mxu0 %v1844_v1  ;;  %v563_v1 = vunpack.c.l.bf16 %v1059_v60 }
 0x364   : > { %v601_v62 = vpop.f32.mrb[4].mxu0 }
 0x365   : > { %v603_v63 = vpop.f32.mrb[5].mxu0  ;;  %v602_v35 = vadd.f32 %v601_v62, %v563_v1 }
 0x366   : > { %v604_v0 = vadd.f32 %v603_v63, %v564_v61  ;;  %v605_v18 = vpop.f32.mrb[6].mxu0 }
 0x367   : > { %v606_v19 = vpop.f32.mrb[7].mxu0  ;;  %v1061_v36 = vmul.f32 -1.442695, %v602_v35 }
 0x368   : > { %v1062_v29 = vmul.f32 -1.442695, %v604_v0 }
 0x36a   : > { %1345 = vpow2.f32 %v1062_v29 }
 0x374   : > { %v1346_v30 = vpop.eup %1345 }
 0x375   : > { %v617_v31 = vadd.f32 1.0, %v1346_v30 }
 0x377   : > { %1347 = vrcp.f32 %v617_v31 }
 0x378   : > { %1349 = vpow2.f32 %v1061_v36 }
 0x381   : > { %v1348_v32 = vpop.eup %1347 }
 0x382   : > { %v620_v33 = vmul.f32 %v1348_v32, %v1976_v58  ;;  %v1350_v38 = vpop.eup %1349  ;;  %v779_v32 = vunpack.c.l.bf16 %v1069_v57 }
 0x383   : > { %v611_v40 = vadd.f32 1.0, %v1350_v38 }
 0x384   : > { %v621_v34 = vpack.c.bf16 %v620_v33, %v620_v33 }
 0x386   : > { %1153 = vmatmul.mubr.bf16.vlgmr.msra.gmra.mrb[4].mxu1 %v621_v34 }
 0x387   : > { %1157 = vmatpush3.bf16.msra.mxu1 %v1915_v20  ;;  %1172 = vmatprep.mubr.msk.bf16.mxu1 %vm1593_vm0, %v1592_v21 }
 0x388   : > { %1158 = vmatprep.subr.bf16.mxu1 %v1592_v21 }
 0x38b   : > { %1159 = vmatpush3.bf16.msra.mxu1 %v1920_v22 }
 0x38c   : > { %1160 = vmatprep.subr.bf16.mxu1 %v1592_v21 }
 0x38f   : > { %1161 = vmatpush3.bf16.msra.mxu1 %v1924_v23 }
 0x390   : > { %1162 = vmatprep.subr.bf16.mxu1 %v1592_v21 }
 0x393   : > { %1163 = vmatpush3.bf16.msra.mxu1 %v1928_v24 }
 0x394   : > { %1164 = vmatprep.subr.bf16.mxu1 %v1592_v21 }
 0x397   : > { %1165 = vmatpush3.bf16.msra.mxu1 %v1932_v25 }
 0x398   : > { %1166 = vmatprep.subr.bf16.mxu1 %v1592_v21 }
 0x39b   : > { %1167 = vmatpush3.bf16.msra.mxu1 %v1935_v26 }
 0x39c   : > { %1168 = vmatprep.subr.bf16.mxu1 %v1592_v21 }
 0x39f   : > { %1169 = vmatpush3.bf16.msra.mxu1 %v1941_v27 }
 0x3a0   : > { %1170 = vmatprep.subr.bf16.mxu1 %v1592_v21 }
 0x3a3   : > { %1171 = vmatpush3.bf16.msra.mxu1 %v1945_v28 }
 0x3a4   : > { %1176 = vmatprep.subr.bf16.mxu1 %v1592_v21 }
 0x459   : > { %v656_v39 = vpop.f32.mrb[4].mxu1 }
 0x45a   : > { %v657_v41 = vadd.f32 %v656_v39, %v565_v37  ;;  %v1154_v42 = vpop.f32.mrb[5].mxu1 }
 0x45b   : > { %v659_v43 = vpop.f32.mrb[6].mxu1 }
 0x45c   : > { %1351 = vtanh.f32 %v657_v41  ;;  %v1155_v44 = vpop.f32.mrb[7].mxu1 }
 0x45d   : > { %1353 = vrcp.f32 %v611_v40 }
 0x466   : > { %v1352_v46 = vpop.eup %1351 }
 0x467   : > { %v663_v47 = vsub.f32 %v1352_v46, %v1976_v58  ;;  %v1354_v48 = vpop.eup %1353 }
 0x469   : > { %v664_v49 = vmul.f32 %v1354_v48, %v663_v47 }
 0x46b   : > { %v2022_v50 = vadd.f32 %v664_v49, %v1976_v58  ;;  %v780_v58 = vunpack.c.h.bf16 %v1069_v57 }
 0x46d   : > { %1063 = vst [vmem:[%s1841_s21 + $0x8] sm:$0xff] %v2022_v50  ;;  %v674_v45 = vpack.c.bf16 %v2022_v50, %v2022_v50 }
 0x46f   : > { %708 = vmatmul.mubr.bf16.vlgmr.msra.gmra.mrb[8].mxu0 %v674_v45 }
 0x470   : > { %784 = vmatpush1.bf16.msra.mxu0 %v1846_v2  ;;  %815 = vmatprep.mubr.bf16.mxu0 %v1591_v3  ;;  %v1064_v2 = vld [vmem:[%s1826_s6 + $0x18] sm:$0xff] }
 0x471   : > { %785 = vmatprep.subr.bf16.mxu0 %v1850_v4  ;;  %v672_v3 = vunpack.c.h.bf16 %v1064_v2 }
 0x474   : > { %786 = vmatpush1.bf16.msra.mxu0 %v1853_v5 }
 0x475   : > { %787 = vmatprep.subr.bf16.mxu0 %v1856_v6 }
 0x478   : > { %788 = vmatpush1.bf16.msra.mxu0 %v1859_v7 }
 0x479   : > { %789 = vmatprep.subr.bf16.mxu0 %v1862_v8 }
 0x47c   : > { %790 = vmatpush1.bf16.msra.mxu0 %v1864_v9 }
 0x47d   : > { %791 = vmatprep.subr.bf16.mxu0 %v1867_v10 }
 0x480   : > { %792 = vmatpush1.bf16.msra.mxu0 %v1870_v11 }
 0x481   : > { %793 = vmatprep.subr.bf16.mxu0 %v1874_v12 }
 0x484   : > { %794 = vmatpush1.bf16.msra.mxu0 %v1877_v13 }
 0x485   : > { %795 = vmatprep.subr.bf16.mxu0 %v1880_v14 }
 0x488   : > { %796 = vmatpush1.bf16.msra.mxu0 %v1883_v15  ;;  %v671_v15 = vunpack.c.l.bf16 %v1064_v2 }
 0x489   : > { %797 = vmatprep.subr.bf16.mxu0 %v1886_v16 }
 0x48c   : > { %798 = vmatpush1.bf16.msra.mxu0 %v1889_v17 }
 0x542   : > { %v709_v4 = vpop.f32.mrb[8].mxu0 }
 0x543   : > { %v711_v5 = vpop.f32.mrb[9].mxu0  ;;  %v710_v16 = vadd.f32 %v709_v4, %v671_v15 }
 0x544   : > { %v712_v6 = vadd.f32 %v711_v5, %v672_v3  ;;  %v713_v7 = vpop.f32.mrb[10].mxu0 }
 0x545   : > { %v714_v8 = vpop.f32.mrb[11].mxu0  ;;  %v1066_v17 = vmul.f32 -1.442695, %v710_v16 }
 0x546   : > { %v1067_v9 = vmul.f32 -1.442695, %v712_v6 }
 0x548   : > { %1355 = vpow2.f32 %v1067_v9 }
 0x552   : > { %v1356_v10 = vpop.eup %1355 }
 0x553   : > { %v725_v11 = vadd.f32 1.0, %v1356_v10 }
 0x555   : > { %1357 = vrcp.f32 %v725_v11 }
 0x556   : > { %1359 = vpow2.f32 %v1066_v17 }
 0x55f   : > { %v1358_v12 = vpop.eup %1357 }
 0x560   : > { %v728_v13 = vmul.f32 %v1358_v12, %v2022_v50 }
 0x562   : > { %v729_v14 = vpack.c.bf16 %v728_v13, %v728_v13 }
 0x564   : > { %1173 = vmatmul.mubr.bf16.vlgmr.msra.gmra.mrb[8].mxu1 %v729_v14 }
 0x565   : > { %1177 = vmatpush3.bf16.msra.mxu1 %v1915_v20  ;;  %1192 = vmatprep.mubr.msk.bf16.mxu1 %vm1593_vm0, %v1592_v21  ;;  %v1065_v20 = vld [vmem:[%s1826_s6 + $0x20] ss:$12 sps:$4 sm:$0xff]  }
 0x566   : > { %1178 = vmatprep.subr.bf16.mxu1 %v1592_v21  ;;  %v781_v1 = vunpack.c.h.bf16 %v1065_v20 }
 0x569   : > { %1179 = vmatpush3.bf16.msra.mxu1 %v1920_v22  ;;  %v673_v22 = vunpack.c.l.bf16 %v1065_v20 }
 0x56a   : > { %1180 = vmatprep.subr.bf16.mxu1 %v1592_v21 }
 0x56d   : > { %1181 = vmatpush3.bf16.msra.mxu1 %v1924_v23  ;;  %v1360_v23 = vpop.eup %1359 }
 0x56e   : > { %1182 = vmatprep.subr.bf16.mxu1 %v1592_v21 }
 0x571   : > { %1183 = vmatpush3.bf16.msra.mxu1 %v1928_v24 }
 0x572   : > { %1184 = vmatprep.subr.bf16.mxu1 %v1592_v21 }
 0x575   : > { %1185 = vmatpush3.bf16.msra.mxu1 %v1932_v25  ;;  %v719_v25 = vadd.f32 1.0, %v1360_v23 }
 0x576   : > { %1186 = vmatprep.subr.bf16.mxu1 %v1592_v21 }
 0x579   : > { %1187 = vmatpush3.bf16.msra.mxu1 %v1935_v26 }
 0x57a   : > { %1188 = vmatprep.subr.bf16.mxu1 %v1592_v21 }
 0x57d   : > { %1189 = vmatpush3.bf16.msra.mxu1 %v1941_v27 }
 0x57e   : > { %1190 = vmatprep.subr.bf16.mxu1 %v1592_v21 }
 0x581   : > { %1191 = vmatpush3.bf16.msra.mxu1 %v1945_v28 }
 0x637   : > { %v764_v24 = vpop.f32.mrb[8].mxu1 }
 0x638   : > { %v765_v26 = vadd.f32 %v764_v24, %v673_v22  ;;  %v1174_v51 = vpop.f32.mrb[9].mxu1 }
 0x639   : > { %v767_v52 = vpop.f32.mrb[10].mxu1 }
 0x63a   : > { %1361 = vtanh.f32 %v765_v26  ;;  %v1175_v27 = vpop.f32.mrb[11].mxu1 }
 0x63b   : > { %1363 = vrcp.f32 %v719_v25 }
 0x644   : > { %v1362_v21 = vpop.eup %1361 }
 0x645   : > { %v771_v28 = vsub.f32 %v1362_v21, %v2022_v50  ;;  %v1364_v53 = vpop.eup %1363 }
 0x647   : > { %v772_v54 = vmul.f32 %v1364_v53, %v771_v28 }
 0x649   : > { %v773_v55 = vadd.f32 %v772_v54, %v2022_v50 }
 0x64b   : > { %1068 = vst [vmem:[%s1841_s21 + $0x10] sm:$0xff] %v773_v55  ;;  %v782_v56 = vpack.c.bf16 %v773_v55, %v773_v55 }
 0x64d   : > { %816 = vmatmul.mubr.bf16.vlgmr.msra.gmra.mrb[12].mxu0 %v782_v56 }
 0x720   : > { %v817_v59 = vpop.f32.mrb[12].mxu0 }
 0x721   : > { %v819_v60 = vpop.f32.mrb[13].mxu0  ;;  %v818_v33 = vadd.f32 %v817_v59, %v779_v32 }
 0x722   : > { %v820_v61 = vadd.f32 %v819_v60, %v780_v58  ;;  %v821_v62 = vpop.f32.mrb[14].mxu0 }
 0x723   : > { %v822_v63 = vpop.f32.mrb[15].mxu0  ;;  %v1071_v34 = vmul.f32 -1.442695, %v818_v33 }
 0x724   : > { %v1072_v0 = vmul.f32 -1.442695, %v820_v61 }
 0x726   : > { %1365 = vpow2.f32 %v1072_v0 }
 0x730   : > { %v1366_v18 = vpop.eup %1365 }
 0x731   : > { %v833_v19 = vadd.f32 1.0, %v1366_v18 }
 0x733   : > { %1367 = vrcp.f32 %v833_v19 }
 0x734   : > { %1369 = vpow2.f32 %v1071_v34 }
 0x73d   : > { %v1368_v29 = vpop.eup %1367 }
 0x73e   : > { %v836_v30 = vmul.f32 %v1368_v29, %v773_v55  ;;  %v1370_v35 = vpop.eup %1369 }
 0x73f   : > { %v827_v37 = vadd.f32 1.0, %v1370_v35 }
 0x740   : > { %v837_v31 = vpack.c.bf16 %v836_v30, %v836_v30 }
 0x742   : > { %1193 = vmatmul.mubr.bf16.vlgmr.msra.gmra.mrb[12].mxu1 %v837_v31 }
 0x815   : > { %v872_v36 = vpop.f32.mrb[12].mxu1 }
 0x816   : > { %v873_v38 = vadd.f32 %v872_v36, %v781_v1  ;;  %v1194_v39 = vpop.f32.mrb[13].mxu1 }
 0x817   : > { %v875_v40 = vpop.f32.mrb[14].mxu1 }
 0x818   : > { %1371 = vtanh.f32 %v873_v38  ;;  %v1195_v41 = vpop.f32.mrb[15].mxu1 }
 0x819   : > { %1373 = vrcp.f32 %v827_v37 }
 0x822   : > { %v1372_v42 = vpop.eup %1371 }
 0x823   : > { %v879_v43 = vsub.f32 %v1372_v42, %v773_v55  ;;  %v1374_v44 = vpop.eup %1373 }
 0x825   : > { %v880_v46 = vmul.f32 %v1374_v44, %v879_v43 }
 0x827   : > { %v881_v47 = vadd.f32 %v880_v46, %v773_v55 }
 0x829   : > { %1073 = vst [vmem:[%s1841_s21 + $0x18] sm:$0xff] %v881_v47  ;;  %884 = vst [vmem:[#allocation2] sm:$0xff] %v881_v47 }
 0x82a   : > { %1502 = shalt.err (!%p1499_p10)
}
 0x82b   : > { %s1503_s12 = scalar_lea.hbm %s2073_s28, 512  ;;  %s1507_s6 = scalar_lea.hbm %s2129_s4, 1024 }
 0x82c   : > { %p1504_p13 = scmp.ne.s32.totalorder %s2073_s28, %s1503_s12  ;;  %p1508_p7 = scmp.lt.u32.totalorder %s2073_s28, %s2129_s4 }
 0x82d   : > { %p1509_p11 = scmp.lt.u32.totalorder %s1507_s6, %s1503_s12  ;;  %p1511_p1 = scmp.lt.u32.totalorder %s1503_s12, %s2073_s28 }
 0x82e   : > { %p1505_p9 = pnand %p1504_p13, %p1766_p2 }
 0x82f   : > { %p1510_p12 = por %p1509_p11, %p1508_p7 }
 0x830   : > { %p1506_p3 = pneg %p1505_p9 }
 0x831   : > { %p1512_p4 = por %p1511_p1, %p1510_p12 }
 0x833   : > { %p1513_p6 = pnand %p1512_p4, %p1506_p3 }
 0x835   : > { %1516 = shalt.err (!%p1513_p6)
}
 0x836   : > { %s1595_s23 = smov 128   ;;  %s1596_s7 = smov 8  }
 0x837   : > { %1213 = dma.vmem_to_hbm [thread:$0]  (%p1766_p2), %s2075_s25, 512, %s2073_s28, %s886_s8, %s1595_s23, %s1595_s23, %s1596_s7  }
 0x838 PF: > { %s915_s14 = sand.u32 1, %s1559_s15   ;;  %p2147_p8 = scmp.ne.s32.totalorder %s2137_s26, 0 }
 0x839   : > { %p2148_p0 = scmp.ge.s32.totalorder %s1579_s20, 2  ;;  %s916_s5 = scalar_lea.sflag [#allocation5], %s915_s14 }
 0x83b   : > { %p1230_p5 = pnand %p2148_p0, %p2147_p8 }
 0x83d   : > { %1554 = dma.done.wait (!%p1230_p5), %s916_s5, 512  }
 0x83e   : > { %1556 = vsyncadd (!%p1230_p5), %s916_s5, 4294966784  ;;  %s22_s20 = sadd.s32 1, %s1579_s20   ;;  %s2149_s15 = smov %s1563_s16 }
 0x83f   : > { %p19_p10 = scmp.ge.s32.totalorder %s22_s20, 4   ;;  %s2150_s16 = smov %s1567_s17 }
 0x840   : > { %s2151_s17 = smov %s1782_s24  ;;  %s2152_s18 = smov %s1575_s19 }
 0x841   : > { %s2153_s19 = smov %s2155_s10  ;;  %21 = sbr.rel (!%p19_p10) target bundleno = 8 (0x8), region = 104 }
 0x848   :  { %921 = vsyncpa [#allocation4], 1 }
 0x849   :  { %923 = vsyncpa [#allocation4 + $0x1], 1 }
 0x84a   :  { %924 = vsyncpa [#allocation7], 1 }
 0x84b   :  { %925 = vsyncpa [#allocation10], 1 }
 0x84c   :  { %926 = vsyncpa [#allocation5], 1 }
 0x84d   :  { %928 = vsyncpa [#allocation5 + $0x1], 1 }

</bundles_post_ra>
